<compile_context>
chip_gen: v5e
topology: v5e:2x2
jax: 0.10.0
libtpu: 0.0.40
codegen_flags: <defaults>
</compile_context>

<pallas_src>
import functools
import math

import jax
import jax.numpy as jnp
from jax import lax
from jax.experimental import pallas as pl
from jax.experimental.pallas import tpu as pltpu


def _round_up(x, m):
    return ((x + m - 1) // m) * m


def _phys_vmem_bytes():
    try:
        info = pltpu.get_tpu_info()
        return int(getattr(info, "vmem_capacity_bytes", 64 << 20))
    except Exception:  # query unavailable -> assume the smallest (v7x) VMEM
        return 64 << 20


def _vmem_limit_bytes(est_bytes):
    phys = _phys_vmem_bytes()
    lim = max(int(est_bytes) + (4 << 20), 8 << 20)
    return int(min(lim, phys - (8 << 20)))


# ----------------------------- Pallas kernels ------------------------------


def _conv3x3s2_relu_kernel(xm_ref, xh_ref, w_ref, b_ref, o_ref, *, th):
    """One (batch, time-tile) step of 3x3 stride-2 VALID conv + bias + ReLU.

    xm_ref: (1, 2*th, Fp, K3)  input rows [2*th*i, 2*th*(i+1))
                               (freq taps pre-gathered: K3 = 3*Cin)
    xh_ref: (1, 1,    Fp, K3)  halo row 2*th*(i+1) (tap-2 of the last output)
    w_ref : (3*K3, Cp)         fused weight, K ordered (time tap, freq tap, ci)
    b_ref : (1, Cp)            f32
    o_ref : (1, th, Fp, Cp)
    """
    f_pad = xm_ref.shape[2]
    k3 = xm_ref.shape[3]
    cout = o_ref.shape[3]

    # Time taps via major-axis reshape/index only (no sublane-strided ops).
    xp = xm_ref[0].reshape(th, 2, f_pad, k3)
    t0 = xp[:, 0]                                             # rows 2*t
    t1 = xp[:, 1]                                             # rows 2*t + 1
    t2 = jnp.concatenate([xp[1:, 0], xh_ref[0]], axis=0)      # rows 2*t + 2

    # Single fused-K matmul: K = 9*Cin, accumulated in f32 on the MXU.
    cols = jnp.concatenate([t0, t1, t2], axis=-1)             # (th, Fp, 3*K3)
    acc = jnp.dot(cols.reshape(th * f_pad, 3 * k3), w_ref[...],
                  preferred_element_type=jnp.float32)
    acc = acc + b_ref[...]
    o_ref[0] = jnp.maximum(acc, 0.0).reshape(th, f_pad, cout).astype(o_ref.dtype)


def _linear_pe_kernel(x_ref, w_ref, b_ref, pe_ref, o_ref, *, xscale):
    # x_ref: (1, TT, D), w_ref: (D, Np), b_ref: (1, Np), pe_ref: (TT, Np)
    y = jnp.dot(x_ref[0], w_ref[...], preferred_element_type=jnp.float32)
    o_ref[0] = (y + b_ref[...]) * xscale + pe_ref[...]


# ------------------------------- wrappers -----------------------------------


def _conv1_xla(x, w1, b1, cp):
    """conv1 (Cin=1) as a tiny XLA conv emitting lane-dense NHWC with channels
    padded to cp.  Its FLOPs are negligible; a Pallas version with Cin=1 is
    hopelessly lane-sparse (see perf review)."""
    cout = w1.shape[0]
    w_hwio = jnp.transpose(w1, (2, 3, 1, 0))                      # (3,3,1,odim)
    w_hwio = jnp.pad(w_hwio, ((0, 0), (0, 0), (0, 0), (0, cp - cout)))
    b = jnp.pad(b1, (0, cp - cout))
    h = lax.conv_general_dilated(
        x[:, :, :, None], w_hwio, window_strides=(2, 2), padding="VALID",
        dimension_numbers=("NHWC", "HWIO", "NHWC"))
    h = jnp.maximum(h + b[None, None, None, :], 0.0)
    t1 = (x.shape[1] - 3) // 2 + 1
    f1 = (x.shape[2] - 3) // 2 + 1
    return h, t1, f1


def _conv3x3s2_relu(h, t_valid, f_valid, w_fused, b_row, *, tile_t,
                    compute_dtype):
    """h: (B, T_arr, F_arr, Cp) NHWC (may carry padding beyond the valid
    (t_valid, f_valid) region).  Returns (y, t_out, f_out) with
    y: (B, t_out_pad, f_out_pad, Cp) in compute_dtype."""
    B, t_arr, f_arr, c_arr = h.shape
    cp = w_fused.shape[1]
    k3 = 3 * c_arr

    t_out = (t_valid - 3) // 2 + 1
    f_out = (f_valid - 3) // 2 + 1
    f_out_pad = _round_up(f_out, 8)

    th = min(_round_up(tile_t, 8), _round_up(t_out, 8))
    if B == 1 and t_out > 8:
        # keep >= 2 "parallel" grid steps for megacore / dual-TensorCore chips
        th = min(th, _round_up(pl.cdiv(t_out, 2), 8))
    n_t = pl.cdiv(t_out, th)
    t_out_pad = n_t * th

    # Pad once so that (a) the in-kernel time window + halo row stay in range
    # and (b) the frequency-tap gather below yields exactly f_out_pad columns.
    # Padded rows/cols only ever feed padded (discarded) outputs.
    t_need = 2 * t_out_pad + 1
    f_need = 2 * f_out_pad + 1
    pad_t = max(0, t_need - t_arr)
    pad_f = max(0, f_need - f_arr)
    if pad_t or pad_f:
        h = jnp.pad(h, ((0, 0), (0, pad_t), (0, pad_f), (0, 0)))

    # Frequency-tap gather (XLA, fused slice+concat+cast -> bf16).
    taps = [h[:, :, dj:dj + 2 * f_out_pad - 1:2, :] for dj in range(3)]
    xf = jnp.concatenate(taps, axis=-1).astype(compute_dtype)  # (B,T,Fp,k3)
    w_fused = w_fused.astype(compute_dtype)

    itemsize = jnp.dtype(compute_dtype).itemsize
    blk = ((2 * th + 1) * f_out_pad * k3 * itemsize            # xm + halo
           + 3 * k3 * cp * itemsize + cp * 4                   # weight + bias
           + th * f_out_pad * cp * itemsize)                   # out block
    tmp = 4 * th * f_out_pad * 3 * k3 * itemsize + th * f_out_pad * cp * 4
    vlim = _vmem_limit_bytes(2 * blk + tmp)

    out = pl.pallas_call(
        functools.partial(_conv3x3s2_relu_kernel, th=th),
        out_shape=jax.ShapeDtypeStruct((B, t_out_pad, f_out_pad, cp),
                                       compute_dtype),
        grid=(B, n_t),
        in_specs=[
            pl.BlockSpec((1, 2 * th, f_out_pad, k3),
                         lambda b, i: (b, i, 0, 0)),
            pl.BlockSpec((1, 1, f_out_pad, k3),
                         lambda b, i: (b, 2 * th * (i + 1), 0, 0)),
            pl.BlockSpec((3 * k3, cp), lambda b, i: (0, 0)),
            pl.BlockSpec((1, cp), lambda b, i: (0, 0)),
        ],
        out_specs=pl.BlockSpec((1, th, f_out_pad, cp),
                               lambda b, i: (b, i, 0, 0)),
        compiler_params=pltpu.CompilerParams(
            dimension_semantics=("parallel", "parallel"),
            vmem_limit_bytes=vlim),
    )(xf, xf, w_fused, b_row)
    return out, t_out, f_out


def _linear_pos_enc(h, w_perm, b_row, pe, xscale, *, compute_dtype):
    """h: (B, T_arr, F3p, Cp); pe: (T_arr, Np). Returns (B, T_arr, Np) f32."""
    B, t_arr, f3p, cp = h.shape
    d = f3p * cp
    npad = w_perm.shape[1]
    x2 = h.reshape(B, t_arr, d).astype(compute_dtype)
    w_perm = w_perm.astype(compute_dtype)

    cap = 512 if B > 1 else max(8, t_arr // 2)
    tt = t_arr
    for cand in (512, 256, 128, 64, 32, 16, 8):     # prefer MXU M >= 256
        if cand <= cap and t_arr % cand == 0:
            tt = cand
            break
    n_t = t_arr // tt

    itemsize = jnp.dtype(compute_dtype).itemsize
    blk = (tt * d * itemsize + d * npad * itemsize + npad * 4
           + tt * npad * 4 + tt * npad * 4)
    vlim = _vmem_limit_bytes(2 * blk + tt * npad * 4)

    return pl.pallas_call(
        functools.partial(_linear_pe_kernel, xscale=xscale),
        out_shape=jax.ShapeDtypeStruct((B, t_arr, npad), jnp.float32),
        grid=(B, n_t),
        in_specs=[
            pl.BlockSpec((1, tt, d), lambda b, i: (b, i, 0)),
            pl.BlockSpec((d, npad), lambda b, i: (0, 0)),
            pl.BlockSpec((1, npad), lambda b, i: (0, 0)),
            pl.BlockSpec((tt, npad), lambda b, i: (i, 0)),  # PE shared over B
        ],
        out_specs=pl.BlockSpec((1, tt, npad), lambda b, i: (b, i, 0)),
        compiler_params=pltpu.CompilerParams(
            dimension_semantics=("parallel", "parallel"),
            vmem_limit_bytes=vlim),
    )(x2, w_perm, b_row, pe)


# --------------------------- weight re-layout --------------------------------


def _prep_conv_weight_fused(w, cin_arr, cp):
    # torch (Cout, Cin, 3, 3) -> fused (9*cin_arr, cp) with K ordered
    # (time tap di, freq tap dj, ci) to match the in-kernel cols assembly.
    cout, cin = w.shape[0], w.shape[1]
    wt = jnp.transpose(w, (2, 3, 1, 0))               # (3, 3, Cin, Cout)
    wf = jnp.zeros((3, 3, cin_arr, cp), w.dtype)
    wf = wf.at[:, :, :cin, :cout].set(wt)
    return wf.reshape(9 * cin_arr, cp)


def _prep_bias(b, cp):
    return jnp.zeros((1, cp), b.dtype).at[0, :b.shape[0]].set(b)


def _prep_linear_weight(lin_w, odim, f3, f3p, cp, npad):
    # torch flatten is (c, f): j = c*f3 + f.  Our NHWC flatten is (f, c_pad):
    # j' = f*cp + c.  Absorb the permutation + zero padding into the weight
    # (padded rows are zero -> padded activation garbage contributes nothing).
    w3 = lin_w.reshape(odim, odim, f3)                # (out, c, f)
    w3 = jnp.transpose(w3, (2, 1, 0))                 # (f, c, out)
    wp = jnp.zeros((f3p, cp, npad), lin_w.dtype)
    wp = wp.at[:f3, :odim, :odim].set(w3)
    return wp.reshape(f3p * cp, npad)


def _sinusoidal_pe(length, d_model):
    # NOTE: matches ESPnet PositionalEncoding for even d_model.
    pos = jnp.arange(length, dtype=jnp.float32)[:, None]
    div = jnp.exp(jnp.arange(0, d_model, 2, dtype=jnp.float32)
                  * (-math.log(10000.0) / d_model))
    pe = jnp.zeros((length, d_model), jnp.float32)
    pe = pe.at[:, 0::2].set(jnp.sin(pos * div))
    pe = pe.at[:, 1::2].set(jnp.cos(pos * div))
    return pe


def make_params(idim, odim, key):
    ks = jax.random.split(key, 8)
    f_out = ((((idim - 1) // 2 - 1) // 2 - 1) // 2)
    return {
        "conv1_w": 0.1 * jax.random.normal(ks[0], (odim, 1, 3, 3), jnp.float32),
        "conv1_b": 0.1 * jax.random.normal(ks[1], (odim,), jnp.float32),
        "conv2_w": 0.05 * jax.random.normal(ks[2], (odim, odim, 3, 3), jnp.float32),
        "conv2_b": 0.1 * jax.random.normal(ks[3], (odim,), jnp.float32),
        "conv3_w": 0.05 * jax.random.normal(ks[4], (odim, odim, 3, 3), jnp.float32),
        "conv3_b": 0.1 * jax.random.normal(ks[5], (odim,), jnp.float32),
        "lin_w": 0.05 * jax.random.normal(ks[6], (odim, odim * f_out), jnp.float32),
        "lin_b": 0.1 * jax.random.normal(ks[7], (odim,), jnp.float32),
    }


# ------------------------------ forward pass --------------------------------


def conv2d_subsampling8(params, x, x_mask, odim, *, tile_t=128,
                        compute_dtype=jnp.bfloat16):
    """x: (B, time, idim) f32; x_mask: (B, 1, time) bool or None."""
    B, T, idim = x.shape
    cp = _round_up(odim, 128)          # lane-dense channel padding

    # weight re-layout (trace time)
    w2 = _prep_conv_weight_fused(params["conv2_w"], cp, cp)
    b2 = _prep_bias(params["conv2_b"], cp)
    w3 = _prep_conv_weight_fused(params["conv3_w"], cp, cp)
    b3 = _prep_bias(params["conv3_b"], cp)

    # conv1 in XLA (lane-dense NHWC/cp output), conv2/conv3 as fused Pallas
    # conv+bias+ReLU kernels with bf16 activations between layers.
    h, t_v, f_v = _conv1_xla(x, params["conv1_w"], params["conv1_b"], cp)
    h, t_v, f_v = _conv3x3s2_relu(h, t_v, f_v, w2, b2,
                                  tile_t=tile_t, compute_dtype=compute_dtype)
    h, t_v, f_v = _conv3x3s2_relu(h, t_v, f_v, w3, b3,
                                  tile_t=tile_t, compute_dtype=compute_dtype)
    # h: (B, T3_arr, F3p, Cp); valid region [:, :t_v, :f_v, :odim]

    # Linear + PositionalEncoding (x*sqrt(d) + pe) kernel
    t3_arr, f3p = h.shape[1], h.shape[2]
    w_lin = _prep_linear_weight(params["lin_w"], odim, f_v, f3p, cp, cp)
    b_lin = _prep_bias(params["lin_b"], cp)
    pe = jnp.pad(_sinusoidal_pe(t3_arr, odim), ((0, 0), (0, cp - odim)))
    y = _linear_pos_enc(h, w_lin, b_lin, pe, float(math.sqrt(odim)),
                        compute_dtype=compute_dtype)
    y = y[:, :t_v, :odim]

    if x_mask is None:
        return y, None
    # identical slicing to the torch module: x_mask[:, :, :-2:2] three times
    m = x_mask[:, :, :-2:2][:, :, :-2:2][:, :, :-2:2]
    return y, m


# ------------------------------ reference -----------------------------------


def _reference_forward(params, x, odim):
    h = x[:, None, :, :]
    for wn, bn in (("conv1_w", "conv1_b"), ("conv2_w", "conv2_b"),
                   ("conv3_w", "conv3_b")):
        h = lax.conv_general_dilated(
            h, params[wn], window_strides=(2, 2), padding="VALID",
            dimension_numbers=("NCHW", "OIHW", "NCHW"))
        h = jnp.maximum(h + params[bn][None, :, None, None], 0.0)
    b, c, t, f = h.shape
    h2 = jnp.transpose(h, (0, 2, 1, 3)).reshape(b, t, c * f)
    y = h2 @ params["lin_w"].T + params["lin_b"]
    return y * math.sqrt(odim) + _sinusoidal_pe(t, odim)[None]


if __name__ == "__main__":
    key = jax.random.PRNGKey(0)
    k_x, k_p = jax.random.split(key)

    B, T, idim, odim = 2, 64, 33, 32
    x = jax.random.normal(k_x, (B, T, idim), jnp.float32)
    x_mask = jnp.ones((B, 1, T), dtype=bool)
    params = make_params(idim, odim, k_p)

    t_out = ((((T - 1) // 2 - 1) // 2 - 1) // 2)
    y_ref = _reference_forward(params, x, odim)

    # default (bf16 operands, f32 accumulation)
    fwd_bf16 = jax.jit(functools.partial(conv2d_subsampling8, odim=odim))
    y, m = jax.block_until_ready(fwd_bf16(params, x, x_mask))
    assert y.shape == (B, t_out, odim), y.shape
    assert m.shape == (B, 1, t_out), m.shape
    assert y.dtype == jnp.float32
    err_bf16 = float(jnp.max(jnp.abs(y - y_ref)))
    assert err_bf16 < 8e-2, f"bf16 max |err| vs reference = {err_bf16}"

    # f32 path (tighter bound; not 1e-4 because DEFAULT matmul precision on
    # TPU uses bf16 MXU passes for f32 operands in both kernel and reference)
    fwd_f32 = jax.jit(functools.partial(conv2d_subsampling8, odim=odim,
                                        compute_dtype=jnp.float32))
    y32, m32 = jax.block_until_ready(fwd_f32(params, x, x_mask))
    assert y32.shape == (B, t_out, odim) and m32.shape == (B, 1, t_out)
    err_f32 = float(jnp.max(jnp.abs(y32 - y_ref)))
    assert err_f32 < 2e-2, f"f32 max |err| vs reference = {err_f32}"

    print("KERNEL_OK")
</pallas_src>

<mosaic_0001>
module attributes {stable_mosaic.version = 11 : i64} {
  func.func @_conv3x3s2_relu_kernel(%arg0: i32, %arg1: i32, %arg2: memref<1x32x8x384xbf16, #tpu.memory_space<vmem>>, %arg3: memref<1x1x8x384xbf16, #tpu.memory_space<vmem>>, %arg4: memref<1152x128xbf16, #tpu.memory_space<vmem>>, %arg5: memref<1x128xf32, #tpu.memory_space<vmem>>, %arg6: memref<1x16x8x128xbf16, #tpu.memory_space<vmem>>) attributes {dimension_semantics = [#tpu.dimension_semantics<parallel>, #tpu.dimension_semantics<parallel>], iteration_bounds = array<i64: 2, 1>, scalar_prefetch = 0 : i64, scratch_operands = 0 : i64, tpu.core_type = #tpu.core_type<tc>, window_params = [{transform_indices = @transform_0, window_bounds = array<i64: 1, 32, 8, 384>}, {transform_indices = @transform_1, window_bounds = array<i64: 1, 1, 8, 384>}, {pipeline_mode = #tpu.pipeline_mode<synchronous>, transform_indices = @transform_2, window_bounds = array<i64: 1152, 128>}, {pipeline_mode = #tpu.pipeline_mode<synchronous>, transform_indices = @transform_3, window_bounds = array<i64: 1, 128>}, {transform_indices = @transform_4, window_bounds = array<i64: 1, 16, 8, 128>}]} {
    %c0 = arith.constant 0 : index
    %c0_0 = arith.constant 0 : index
    %c0_1 = arith.constant 0 : index
    %c0_2 = arith.constant 0 : index
    %0 = vector.load %arg2[%c0, %c0_0, %c0_1, %c0_2] : memref<1x32x8x384xbf16, #tpu.memory_space<vmem>>, vector<1x32x8x384xbf16>
    %1 = vector.shape_cast %0 : vector<1x32x8x384xbf16> to vector<32x8x384xbf16>
    %2 = vector.shape_cast %1 : vector<32x8x384xbf16> to vector<16x2x8x384xbf16>
    %3 = vector.extract_strided_slice %2 {offsets = [0, 0, 0, 0], sizes = [16, 1, 8, 384], strides = [1, 1, 1, 1]} : vector<16x2x8x384xbf16> to vector<16x1x8x384xbf16>
    %4 = vector.shape_cast %3 : vector<16x1x8x384xbf16> to vector<16x8x384xbf16>
    %5 = vector.extract_strided_slice %2 {offsets = [0, 1, 0, 0], sizes = [16, 1, 8, 384], strides = [1, 1, 1, 1]} : vector<16x2x8x384xbf16> to vector<16x1x8x384xbf16>
    %6 = vector.shape_cast %5 : vector<16x1x8x384xbf16> to vector<16x8x384xbf16>
    %7 = vector.extract_strided_slice %2 {offsets = [1, 0, 0, 0], sizes = [15, 1, 8, 384], strides = [1, 1, 1, 1]} : vector<16x2x8x384xbf16> to vector<15x1x8x384xbf16>
    %8 = vector.shape_cast %7 : vector<15x1x8x384xbf16> to vector<15x8x384xbf16>
    %c0_3 = arith.constant 0 : index
    %c0_4 = arith.constant 0 : index
    %c0_5 = arith.constant 0 : index
    %c0_6 = arith.constant 0 : index
    %9 = vector.load %arg3[%c0_3, %c0_4, %c0_5, %c0_6] : memref<1x1x8x384xbf16, #tpu.memory_space<vmem>>, vector<1x1x8x384xbf16>
    %10 = vector.shape_cast %9 : vector<1x1x8x384xbf16> to vector<1x8x384xbf16>
    %11 = tpu.concatenate %8, %10 in 0 : vector<15x8x384xbf16>, vector<1x8x384xbf16> -> vector<16x8x384xbf16>
    %12 = tpu.concatenate %4, %6, %11 in 2 : vector<16x8x384xbf16>, vector<16x8x384xbf16>, vector<16x8x384xbf16> -> vector<16x8x1152xbf16>
    %13 = vector.shape_cast %12 : vector<16x8x1152xbf16> to vector<128x1152xbf16>
    %c0_7 = arith.constant 0 : index
    %c0_8 = arith.constant 0 : index
    %14 = vector.load %arg4[%c0_7, %c0_8] : memref<1152x128xbf16, #tpu.memory_space<vmem>>, vector<1152x128xbf16>
    %cst = arith.constant dense<0.000000e+00> : vector<128x128xf32>
    %15 = tpu.matmul %13, %14, %cst {dimension_numbers = #tpu.dot_dimension_numbers<[1], [0], [0], [1], [0, 0, 1, 1], [], []>} : vector<128x1152xbf16>, vector<1152x128xbf16>, vector<128x128xf32> -> vector<128x128xf32>
    %c0_9 = arith.constant 0 : index
    %c0_10 = arith.constant 0 : index
    %16 = vector.load %arg5[%c0_9, %c0_10] : memref<1x128xf32, #tpu.memory_space<vmem>>, vector<1x128xf32>
    %17 = vector.broadcast %16 : vector<1x128xf32> to vector<128x128xf32>
    %18 = arith.addf %15, %17 : vector<128x128xf32>
    %cst_11 = arith.constant 0.000000e+00 : f32
    %19 = vector.broadcast %cst_11 : f32 to vector<128x128xf32>
    %20 = arith.maximumf %18, %19 : vector<128x128xf32>
    %21 = vector.shape_cast %20 : vector<128x128xf32> to vector<16x8x128xf32>
    %22 = arith.truncf %21 : vector<16x8x128xf32> to vector<16x8x128xbf16>
    %c0_12 = arith.constant 0 : index
    %c0_13 = arith.constant 0 : index
    %c0_14 = arith.constant 0 : index
    %c0_15 = arith.constant 0 : index
    %23 = vector.load %arg6[%c0_12, %c0_13, %c0_14, %c0_15] : memref<1x16x8x128xbf16, #tpu.memory_space<vmem>>, vector<1x16x8x128xbf16>
    %24 = vector.shape_cast %23 : vector<1x16x8x128xbf16> to vector<16x8x128xbf16>
    %25 = vector.shape_cast %22 : vector<16x8x128xbf16> to vector<1x16x8x128xbf16>
    tpu.vector_store %arg6[%c0_12, %c0_13, %c0_14, %c0_15], %25 {strides = array<i32>} : memref<1x16x8x128xbf16, #tpu.memory_space<vmem>>, vector<1x16x8x128xbf16>,
    return
  }
  func.func @transform_0(%arg0: i32, %arg1: i32) -> (i32, i32, i32, i32) {
    %c0_i32 = arith.constant 0 : i32
    %c0_i32_0 = arith.constant 0 : i32
    %c0_i32_1 = arith.constant 0 : i32
    return %arg0, %arg1, %c0_i32, %c0_i32_0 : i32, i32, i32, i32
  }
  func.func @transform_1(%arg0: i32, %arg1: i32) -> (i32, i32, i32, i32) {
    %c1_i32 = arith.constant 1 : i32
    %0 = arith.addi %arg1, %c1_i32 : i32
    %c32_i32 = arith.constant 32 : i32
    %1 = arith.muli %c32_i32, %0 : i32
    %c0_i32 = arith.constant 0 : i32
    %c0_i32_0 = arith.constant 0 : i32
    %c0_i32_1 = arith.constant 0 : i32
    return %arg0, %1, %c0_i32, %c0_i32_0 : i32, i32, i32, i32
  }
  func.func @transform_2(%arg0: i32, %arg1: i32) -> (i32, i32) {
    %c0_i32 = arith.constant 0 : i32
    %c0_i32_0 = arith.constant 0 : i32
    %c0_i32_1 = arith.constant 0 : i32
    return %c0_i32, %c0_i32_0 : i32, i32
  }
  func.func @transform_3(%arg0: i32, %arg1: i32) -> (i32, i32) {
    %c0_i32 = arith.constant 0 : i32
    %c0_i32_0 = arith.constant 0 : i32
    %c0_i32_1 = arith.constant 0 : i32
    return %c0_i32, %c0_i32_0 : i32, i32
  }
  func.func @transform_4(%arg0: i32, %arg1: i32) -> (i32, i32, i32, i32) {
    %c0_i32 = arith.constant 0 : i32
    %c0_i32_0 = arith.constant 0 : i32
    %c0_i32_1 = arith.constant 0 : i32
    return %arg0, %arg1, %c0_i32, %c0_i32_0 : i32, i32, i32, i32
  }
}

module attributes {stable_mosaic.version = 11 : i64} {
  func.func @_conv3x3s2_relu_kernel(%arg0: i32, %arg1: i32, %arg2: memref<1x16x8x384xbf16, #tpu.memory_space<vmem>>, %arg3: memref<1x1x8x384xbf16, #tpu.memory_space<vmem>>, %arg4: memref<1152x128xbf16, #tpu.memory_space<vmem>>, %arg5: memref<1x128xf32, #tpu.memory_space<vmem>>, %arg6: memref<1x8x8x128xbf16, #tpu.memory_space<vmem>>) attributes {dimension_semantics = [#tpu.dimension_semantics<parallel>, #tpu.dimension_semantics<parallel>], iteration_bounds = array<i64: 2, 1>, scalar_prefetch = 0 : i64, scratch_operands = 0 : i64, tpu.core_type = #tpu.core_type<tc>, window_params = [{transform_indices = @transform_0, window_bounds = array<i64: 1, 16, 8, 384>}, {transform_indices = @transform_1, window_bounds = array<i64: 1, 1, 8, 384>}, {pipeline_mode = #tpu.pipeline_mode<synchronous>, transform_indices = @transform_2, window_bounds = array<i64: 1152, 128>}, {pipeline_mode = #tpu.pipeline_mode<synchronous>, transform_indices = @transform_3, window_bounds = array<i64: 1, 128>}, {transform_indices = @transform_4, window_bounds = array<i64: 1, 8, 8, 128>}]} {
    %c0 = arith.constant 0 : index
    %c0_0 = arith.constant 0 : index
    %c0_1 = arith.constant 0 : index
    %c0_2 = arith.constant 0 : index
    %0 = vector.load %arg2[%c0, %c0_0, %c0_1, %c0_2] : memref<1x16x8x384xbf16, #tpu.memory_space<vmem>>, vector<1x16x8x384xbf16>
    %1 = vector.shape_cast %0 : vector<1x16x8x384xbf16> to vector<16x8x384xbf16>
    %2 = vector.shape_cast %1 : vector<16x8x384xbf16> to vector<8x2x8x384xbf16>
    %3 = vector.extract_strided_slice %2 {offsets = [0, 0, 0, 0], sizes = [8, 1, 8, 384], strides = [1, 1, 1, 1]} : vector<8x2x8x384xbf16> to vector<8x1x8x384xbf16>
    %4 = vector.shape_cast %3 : vector<8x1x8x384xbf16> to vector<8x8x384xbf16>
    %5 = vector.extract_strided_slice %2 {offsets = [0, 1, 0, 0], sizes = [8, 1, 8, 384], strides = [1, 1, 1, 1]} : vector<8x2x8x384xbf16> to vector<8x1x8x384xbf16>
    %6 = vector.shape_cast %5 : vector<8x1x8x384xbf16> to vector<8x8x384xbf16>
    %7 = vector.extract_strided_slice %2 {offsets = [1, 0, 0, 0], sizes = [7, 1, 8, 384], strides = [1, 1, 1, 1]} : vector<8x2x8x384xbf16> to vector<7x1x8x384xbf16>
    %8 = vector.shape_cast %7 : vector<7x1x8x384xbf16> to vector<7x8x384xbf16>
    %c0_3 = arith.constant 0 : index
    %c0_4 = arith.constant 0 : index
    %c0_5 = arith.constant 0 : index
    %c0_6 = arith.constant 0 : index
    %9 = vector.load %arg3[%c0_3, %c0_4, %c0_5, %c0_6] : memref<1x1x8x384xbf16, #tpu.memory_space<vmem>>, vector<1x1x8x384xbf16>
    %10 = vector.shape_cast %9 : vector<1x1x8x384xbf16> to vector<1x8x384xbf16>
    %11 = tpu.concatenate %8, %10 in 0 : vector<7x8x384xbf16>, vector<1x8x384xbf16> -> vector<8x8x384xbf16>
    %12 = tpu.concatenate %4, %6, %11 in 2 : vector<8x8x384xbf16>, vector<8x8x384xbf16>, vector<8x8x384xbf16> -> vector<8x8x1152xbf16>
    %13 = vector.shape_cast %12 : vector<8x8x1152xbf16> to vector<64x1152xbf16>
    %c0_7 = arith.constant 0 : index
    %c0_8 = arith.constant 0 : index
    %14 = vector.load %arg4[%c0_7, %c0_8] : memref<1152x128xbf16, #tpu.memory_space<vmem>>, vector<1152x128xbf16>
    %cst = arith.constant dense<0.000000e+00> : vector<64x128xf32>
    %15 = tpu.matmul %13, %14, %cst {dimension_numbers = #tpu.dot_dimension_numbers<[1], [0], [0], [1], [0, 0, 1, 1], [], []>} : vector<64x1152xbf16>, vector<1152x128xbf16>, vector<64x128xf32> -> vector<64x128xf32>
    %c0_9 = arith.constant 0 : index
    %c0_10 = arith.constant 0 : index
    %16 = vector.load %arg5[%c0_9, %c0_10] : memref<1x128xf32, #tpu.memory_space<vmem>>, vector<1x128xf32>
    %17 = vector.broadcast %16 : vector<1x128xf32> to vector<64x128xf32>
    %18 = arith.addf %15, %17 : vector<64x128xf32>
    %cst_11 = arith.constant 0.000000e+00 : f32
    %19 = vector.broadcast %cst_11 : f32 to vector<64x128xf32>
    %20 = arith.maximumf %18, %19 : vector<64x128xf32>
    %21 = vector.shape_cast %20 : vector<64x128xf32> to vector<8x8x128xf32>
    %22 = arith.truncf %21 : vector<8x8x128xf32> to vector<8x8x128xbf16>
    %c0_12 = arith.constant 0 : index
    %c0_13 = arith.constant 0 : index
    %c0_14 = arith.constant 0 : index
    %c0_15 = arith.constant 0 : index
    %23 = vector.load %arg6[%c0_12, %c0_13, %c0_14, %c0_15] : memref<1x8x8x128xbf16, #tpu.memory_space<vmem>>, vector<1x8x8x128xbf16>
    %24 = vector.shape_cast %23 : vector<1x8x8x128xbf16> to vector<8x8x128xbf16>
    %25 = vector.shape_cast %22 : vector<8x8x128xbf16> to vector<1x8x8x128xbf16>
    tpu.vector_store %arg6[%c0_12, %c0_13, %c0_14, %c0_15], %25 {strides = array<i32>} : memref<1x8x8x128xbf16, #tpu.memory_space<vmem>>, vector<1x8x8x128xbf16>,
    return
  }
  func.func @transform_0(%arg0: i32, %arg1: i32) -> (i32, i32, i32, i32) {
    %c0_i32 = arith.constant 0 : i32
    %c0_i32_0 = arith.constant 0 : i32
    %c0_i32_1 = arith.constant 0 : i32
    return %arg0, %arg1, %c0_i32, %c0_i32_0 : i32, i32, i32, i32
  }
  func.func @transform_1(%arg0: i32, %arg1: i32) -> (i32, i32, i32, i32) {
    %c1_i32 = arith.constant 1 : i32
    %0 = arith.addi %arg1, %c1_i32 : i32
    %c16_i32 = arith.constant 16 : i32
    %1 = arith.muli %c16_i32, %0 : i32
    %c0_i32 = arith.constant 0 : i32
    %c0_i32_0 = arith.constant 0 : i32
    %c0_i32_1 = arith.constant 0 : i32
    return %arg0, %1, %c0_i32, %c0_i32_0 : i32, i32, i32, i32
  }
  func.func @transform_2(%arg0: i32, %arg1: i32) -> (i32, i32) {
    %c0_i32 = arith.constant 0 : i32
    %c0_i32_0 = arith.constant 0 : i32
    %c0_i32_1 = arith.constant 0 : i32
    return %c0_i32, %c0_i32_0 : i32, i32
  }
  func.func @transform_3(%arg0: i32, %arg1: i32) -> (i32, i32) {
    %c0_i32 = arith.constant 0 : i32
    %c0_i32_0 = arith.constant 0 : i32
    %c0_i32_1 = arith.constant 0 : i32
    return %c0_i32, %c0_i32_0 : i32, i32
  }
  func.func @transform_4(%arg0: i32, %arg1: i32) -> (i32, i32, i32, i32) {
    %c0_i32 = arith.constant 0 : i32
    %c0_i32_0 = arith.constant 0 : i32
    %c0_i32_1 = arith.constant 0 : i32
    return %arg0, %arg1, %c0_i32, %c0_i32_0 : i32, i32, i32, i32
  }
}

module attributes {stable_mosaic.version = 11 : i64} {
  func.func @_linear_pe_kernel(%arg0: i32, %arg1: i32, %arg2: memref<1x8x1024xbf16, #tpu.memory_space<vmem>>, %arg3: memref<1024x128xbf16, #tpu.memory_space<vmem>>, %arg4: memref<1x128xf32, #tpu.memory_space<vmem>>, %arg5: memref<8x128xf32, #tpu.memory_space<vmem>>, %arg6: memref<1x8x128xf32, #tpu.memory_space<vmem>>) attributes {dimension_semantics = [#tpu.dimension_semantics<parallel>, #tpu.dimension_semantics<parallel>], iteration_bounds = array<i64: 2, 1>, scalar_prefetch = 0 : i64, scratch_operands = 0 : i64, tpu.core_type = #tpu.core_type<tc>, window_params = [{transform_indices = @transform_0, window_bounds = array<i64: 1, 8, 1024>}, {pipeline_mode = #tpu.pipeline_mode<synchronous>, transform_indices = @transform_1, window_bounds = array<i64: 1024, 128>}, {pipeline_mode = #tpu.pipeline_mode<synchronous>, transform_indices = @transform_2, window_bounds = array<i64: 1, 128>}, {transform_indices = @transform_3, window_bounds = array<i64: 8, 128>}, {transform_indices = @transform_4, window_bounds = array<i64: 1, 8, 128>}]} {
    %c0 = arith.constant 0 : index
    %c0_0 = arith.constant 0 : index
    %c0_1 = arith.constant 0 : index
    %0 = vector.load %arg2[%c0, %c0_0, %c0_1] : memref<1x8x1024xbf16, #tpu.memory_space<vmem>>, vector<1x8x1024xbf16>
    %1 = vector.shape_cast %0 : vector<1x8x1024xbf16> to vector<8x1024xbf16>
    %c0_2 = arith.constant 0 : index
    %c0_3 = arith.constant 0 : index
    %2 = vector.load %arg3[%c0_2, %c0_3] : memref<1024x128xbf16, #tpu.memory_space<vmem>>, vector<1024x128xbf16>
    %cst = arith.constant dense<0.000000e+00> : vector<8x128xf32>
    %3 = tpu.matmul %1, %2, %cst {dimension_numbers = #tpu.dot_dimension_numbers<[1], [0], [0], [1], [0, 0, 1, 1], [], []>} : vector<8x1024xbf16>, vector<1024x128xbf16>, vector<8x128xf32> -> vector<8x128xf32>
    %c0_4 = arith.constant 0 : index
    %c0_5 = arith.constant 0 : index
    %4 = vector.load %arg4[%c0_4, %c0_5] : memref<1x128xf32, #tpu.memory_space<vmem>>, vector<1x128xf32>
    %5 = vector.broadcast %4 : vector<1x128xf32> to vector<8x128xf32>
    %6 = arith.addf %3, %5 : vector<8x128xf32>
    %cst_6 = arith.constant 5.65685415 : f32
    %7 = vector.broadcast %cst_6 : f32 to vector<8x128xf32>
    %8 = arith.mulf %6, %7 : vector<8x128xf32>
    %c0_7 = arith.constant 0 : index
    %c0_8 = arith.constant 0 : index
    %9 = vector.load %arg5[%c0_7, %c0_8] : memref<8x128xf32, #tpu.memory_space<vmem>>, vector<8x128xf32>
    %10 = arith.addf %8, %9 : vector<8x128xf32>
    %c0_9 = arith.constant 0 : index
    %c0_10 = arith.constant 0 : index
    %c0_11 = arith.constant 0 : index
    %11 = vector.load %arg6[%c0_9, %c0_10, %c0_11] : memref<1x8x128xf32, #tpu.memory_space<vmem>>, vector<1x8x128xf32>
    %12 = vector.shape_cast %11 : vector<1x8x128xf32> to vector<8x128xf32>
    %13 = vector.shape_cast %10 : vector<8x128xf32> to vector<1x8x128xf32>
    tpu.vector_store %arg6[%c0_9, %c0_10, %c0_11], %13 {strides = array<i32>} : memref<1x8x128xf32, #tpu.memory_space<vmem>>, vector<1x8x128xf32>,
    return
  }
  func.func @transform_0(%arg0: i32, %arg1: i32) -> (i32, i32, i32) {
    %c0_i32 = arith.constant 0 : i32
    %c0_i32_0 = arith.constant 0 : i32
    return %arg0, %arg1, %c0_i32 : i32, i32, i32
  }
  func.func @transform_1(%arg0: i32, %arg1: i32) -> (i32, i32) {
    %c0_i32 = arith.constant 0 : i32
    %c0_i32_0 = arith.constant 0 : i32
    %c0_i32_1 = arith.constant 0 : i32
    return %c0_i32, %c0_i32_0 : i32, i32
  }
  func.func @transform_2(%arg0: i32, %arg1: i32) -> (i32, i32) {
    %c0_i32 = arith.constant 0 : i32
    %c0_i32_0 = arith.constant 0 : i32
    %c0_i32_1 = arith.constant 0 : i32
    return %c0_i32, %c0_i32_0 : i32, i32
  }
  func.func @transform_3(%arg0: i32, %arg1: i32) -> (i32, i32) {
    %c0_i32 = arith.constant 0 : i32
    %c0_i32_0 = arith.constant 0 : i32
    return %arg1, %c0_i32 : i32, i32
  }
  func.func @transform_4(%arg0: i32, %arg1: i32) -> (i32, i32, i32) {
    %c0_i32 = arith.constant 0 : i32
    %c0_i32_0 = arith.constant 0 : i32
    return %arg0, %arg1, %c0_i32 : i32, i32, i32
  }
}

</mosaic_0001>

<bundles_post_ra>
// kernel: conv2d_subsampling8.3
= control target key start
LH: loop header
LB: loop body
LE: loop exit
PB: predicated region body
PF: predicated region fallthrough
CT: control target
= control target key end

     0   :  { %s2510_s15 = smov 0   ;;  %s2512_s16 = smov 0   ;;  %s3254_s0 = inlined_call_operand.vmem [shape: bf16[2,33,8,384], index: 0, kind: input, shape index: {}, may-alias: {0,1}]   ;;  %s3255_s1 = inlined_call_operand.vmem [shape: bf16[2,33,8,384], index: 1, kind: input, shape index: {}, may-alias: {0,1}]   ;;  %s3256_s2 = inlined_call_operand.vmem [shape: bf16[1152,128], index: 2, kind: input, shape index: {}]   ;;  %s3257_s3 = inlined_call_operand.vmem [shape: f32[1,128], index: 3, kind: input, shape index: {}]   ;;  %s3258_s4 = inlined_call_operand.vmem [shape: bf16[2,16,8,128], index: 4, kind: output, shape index: {}]  }
   0x1   :  { %s2514_s17 = smov 0  }
   0x2 LB: > { %s26_s18 = sadd.s32 1, %s2479_s16  ;;  %p1872_p0 = scmp.ge.s32.totalorder %s2483_s17, 1  ;;  %s2483_s17 = sphi %s2514_s17, %s14_s17   ;;  %s2479_s16 = sphi %s2512_s16, %s3332_s16   ;;  %s2475_s15 = sphi %s2510_s15, %s3331_s15  }
   0x3   : > { %p28_p1 = scmp.ge.s32.totalorder %s26_s18, 2  ;;  %p218_p2 = scmp.lt.s32.totalorder %s2483_s17, 3 }
   0x5   : > { %s3334_s18 = smov (%p28_p1, %s26_s18), 0  ;;  %p219_p3 = pnand %p1872_p0, %p218_p2 }
   0x6   : > { %p275_p4 = scmp.lt.s32.totalorder (!%p219_p3), %s2475_s15, 1 }
   0x7   : > { %222 = sbr.rel (%p219_p3) target bundleno = 467 (0x1d3), region = 36 }
   0xc   : > { %v2297_v0 = vld [vmem:[%s3256_s2 + $0x38] sm:$0xff]  ;;  %v2296_v1 = vld [vmem:[%s3256_s2 + $0x30] sm:$0xff]  ;;  %s3336_s15 = smov (!%p275_p4, %s2475_s15), 1  ;;  %v2295_v2 = vld [vmem:[%s3256_s2 + $0x28] sm:$0xff] }
   0xd   : > { %2409 = vmatpush.bf16.msra.mxu1 %v2297_v0  ;;  %2410 = vmatpush.bf16.msra.mxu2 %v2297_v0  ;;  %s2433_s25 = smul.u32 396, %s3336_s15  ;;  %v2294_v3 = vld [vmem:[%s3256_s2 + $0x20] sm:$0xff]  ;;  %v2293_v4 = vld [vmem:[%s3256_s2 + $0x18] sm:$0xff]  ;;  %v2292_v9 = vld [vmem:[%s3256_s2 + $0x10] sm:$0xff] }
   0xe   : > { %2411 = vmatpush.bf16.msra.mxu3 %v2297_v0  ;;  %1268 = vmatpush.bf16.msra.mxu0 %v2297_v0  ;;  %v2291_v11 = vld [vmem:[%s3256_s2 + $0x8] sm:$0xff]  ;;  %v2290_v23 = vld [vmem:[%s3256_s2] sm:$0xff]  ;;  %v2313_v27 = vld [vmem:[%s3256_s2 + $0xb8] sm:$0xff] }
   0xf   : > { %s2548_s30 = scalar_lea.vmem %s3254_s0, %s2433_s25  ;;  %v2305_v28 = vld [vmem:[%s3256_s2 + $0x78] sm:$0xff]  ;;  %v2312_v35 = vld [vmem:[%s3256_s2 + $0xb0] sm:$0xff]  ;;  %v2311_v41 = vld [vmem:[%s3256_s2 + $0xa8] sm:$0xff]  ;;  %s2264_s28 = sadd.s32 384, %s2433_s25 }
  0x10   : > { %v2554_v5 = vld [vmem:[%s2548_s30 + $0x18] sm:$0xff]  ;;  %v2557_v6 = vld [vmem:[%s2548_s30 + $0x30] sm:$0xff]  ;;  %v2572_v12 = vld [vmem:[%s2548_s30 + $0x60] sm:$0xff]  ;;  %s300_s6 = scalar_lea.vmem %s3255_s1, %s2264_s28  ;;  %s2265_s25 = sshll.u32 %s3336_s15, 6 }
  0x11   : > { %2412 = vmatpush.bf16.msra.mxu1 %v2296_v1  ;;  %2413 = vmatpush.bf16.msra.mxu2 %v2296_v1  ;;  %v414_v7 = vunpack.c.l.b16 %v2554_v5  ;;  %v417_v8 = vunpack.c.l.b16 %v2557_v6  ;;  %v2575_v13 = vld [vmem:[%s2548_s30 + $0x78] sm:$0xff]  ;;  %v2578_v14 = vld [vmem:[%s2548_s30 + $0xc0] sm:$0xff]  ;;  %v423_v19 = vunpack.c.l.b16 %v2572_v12  ;;  %v2304_v36 = vld [vmem:[%s3256_s2 + $0x70] sm:$0xff]  ;;  %v415_v37 = vunpack.c.h.b16 %v2554_v5  ;;  %s3221_s8 = scalar_lea.vmem %s3258_s4, %s2265_s25 }
  0x12   : > { %2414 = vmatpush.bf16.msra.mxu3 %v2296_v1  ;;  %1269 = vmatpush.bf16.msra.mxu0 %v2296_v1  ;;  %v2581_v15 = vld [vmem:[%s2548_s30 + $0xd8] sm:$0xff]  ;;  %v2584_v16 = vld [vmem:[%s2548_s30 + $0x120] sm:$0xff]  ;;  %v3291_v20 = vunpack.c.l.b16 %v2575_v13  ;;  %v3280_v21 = vunpack.c.l.b16 %v2578_v14  ;;  %v418_v38 = vunpack.c.h.b16 %v2557_v6  ;;  %v2320_v39 = vld [vmem:[%s3256_s2 + $0xf0] sm:$0xff] }
  0x13   : > { %v2566_v10 = vpack.c.b16 %v417_v8, %v414_v7  ;;  %v2587_v17 = vld [vmem:[%s2548_s30 + $0x138] sm:$0xff]  ;;  %v2590_v18 = vld [vmem:[%s2548_s30] sm:$0xff]  ;;  %v3275_v22 = vunpack.c.l.b16 %v2581_v15  ;;  %v3264_v24 = vunpack.c.l.b16 %v2584_v16  ;;  %v2328_v40 = vld [vmem:[%s3256_s2 + $0x130] sm:$0xff] }
  0x14   : > { %v3261_v25 = vunpack.c.l.b16 %v2587_v17  ;;  %v411_v26 = vunpack.c.l.b16 %v2590_v18  ;;  %v710_v29 = vpack.c.b16 %v3291_v20, %v423_v19  ;;  %v2321_v33 = vld [vmem:[%s3256_s2 + $0xf8] sm:$0xff]  ;;  %v2303_v42 = vld [vmem:[%s3256_s2 + $0x68] sm:$0xff]  ;;  %v2650_v43 = vpack.c.b16 %v418_v38, %v415_v37  ;;  %v2659_v46 = vld [vmem:[%s2548_s30 + $0x90] sm:$0xff] }
  0x15   : > { %2415 = vmatpush.bf16.msra.mxu1 %v2295_v2  ;;  %2416 = vmatpush.bf16.msra.mxu2 %v2295_v2  ;;  %v728_v30 = vpack.c.b16 %v3275_v22, %v3280_v21  ;;  %v2329_v34 = vld [vmem:[%s3256_s2 + $0x138] sm:$0xff]  ;;  %v2319_v44 = vld [vmem:[%s3256_s2 + $0xe8] sm:$0xff]  ;;  %v2665_v48 = vld [vmem:[%s2548_s30 + $0xf0] sm:$0xff]  ;;  %v3290_v55 = vunpack.c.l.b16 %v2659_v46 }
  0x16   : > { %2417 = vmatpush.bf16.msra.mxu3 %v2295_v2  ;;  %1270 = vmatpush.bf16.msra.mxu0 %v2295_v2  ;;  %v746_v31 = vpack.c.b16 %v3261_v25, %v3264_v24  ;;  %v692_v32 = vpack.c.b16 %v414_v7, %v411_v26  ;;  %v2327_v45 = vld [vmem:[%s3256_s2 + $0x128] sm:$0xff]  ;;  %v2671_v50 = vld [vmem:[%s2548_s30 + $0x150] sm:$0xff]  ;;  %v2310_v53 = vld [vmem:[%s3256_s2 + $0xa0] sm:$0xff]  ;;  %v3274_v57 = vunpack.c.l.b16 %v2665_v48 }
  0x17   : > { %v2662_v47 = vld [vmem:[%s2548_s30 + $0xa8] sm:$0xff]  ;;  %v2302_v54 = vld [vmem:[%s3256_s2 + $0x60] sm:$0xff]  ;;  %v3260_v59 = vunpack.c.l.b16 %v2671_v50  ;;  %v2309_v0 = vld [vmem:[%s3256_s2 + $0x98] sm:$0xff] }
  0x18   : > { %v2668_v49 = vld [vmem:[%s2548_s30 + $0x108] sm:$0xff]  ;;  %v3281_v56 = vunpack.c.l.b16 %v2662_v47  ;;  %v2318_v62 = vld [vmem:[%s3256_s2 + $0xe0] sm:$0xff]  ;;  %v2301_v1 = vld [vmem:[%s3256_s2 + $0x58] sm:$0xff] }
  0x19   : > { %2418 = vmatpush.bf16.msra.mxu1 %v2294_v3  ;;  %2419 = vmatpush.bf16.msra.mxu2 %v2294_v3  ;;  %v2674_v51 = vld [vmem:[%s2548_s30 + $0x168] sm:$0xff]  ;;  %v3265_v58 = vunpack.c.l.b16 %v2668_v49  ;;  %v2326_v63 = vld [vmem:[%s3256_s2 + $0x120] sm:$0xff]  ;;  %v2714_v7 = vld [vmem:[%s2548_s30 + $0x38] sm:$0xf] }
  0x1a   : > { %2420 = vmatpush.bf16.msra.mxu3 %v2294_v3  ;;  %1271 = vmatpush.bf16.msra.mxu0 %v2294_v3  ;;  %v2677_v52 = vld [vmem:[%s2548_s30 + $0x48] sm:$0xff]  ;;  %v3259_v60 = vunpack.c.l.b16 %v2674_v51  ;;  %v318_v2 = vld [vmem:[%s2548_s30 + $0x20] sm:$0xf]  ;;  %v719_v3 = vpack.c.b16 %v3281_v56, %v3290_v55  ;;  %v2325_v26 = vld [vmem:[%s3256_s2 + $0x118] sm:$0xff] }
  0x1b   : > { %v420_v61 = vunpack.c.l.b16 %v2677_v52  ;;  %v2352_v5 = vld [vmem:[%s3256_s2 + $0x1f0] sm:$0xff]  ;;  %v2342_v6 = vld [vmem:[%s3256_s2 + $0x1a0] sm:$0xff] }
  0x1c   : > { %v2284_v25 = vld [vmem:[%s2548_s30 + $0x130] sm:$0xf] }
  0x1d   : > { %2421 = vmatpush.bf16.msra.mxu1 %v2293_v4  ;;  %2422 = vmatpush.bf16.msra.mxu2 %v2293_v4 }
  0x1e   : > { %2423 = vmatpush.bf16.msra.mxu3 %v2293_v4  ;;  %1272 = vmatpush.bf16.msra.mxu0 %v2293_v4  ;;  %v737_v4 = vpack.c.b16 %v3265_v58, %v3274_v57 }
  0x21   : > { %2424 = vmatpush.bf16.msra.mxu1 %v2292_v9  ;;  %2425 = vmatpush.bf16.msra.mxu2 %v2292_v9 }
  0x22   : > { %2426 = vmatpush.bf16.msra.mxu3 %v2292_v9  ;;  %1273 = vmatpush.bf16.msra.mxu0 %v2292_v9  ;;  %v755_v9 = vpack.c.b16 %v3259_v60, %v3260_v59  ;;  %v2346_v59 = vld [vmem:[%s3256_s2 + $0x1c0] sm:$0xff] }
  0x25   : > { %2427 = vmatpush.bf16.msra.mxu1 %v2291_v11  ;;  %2428 = vmatpush.bf16.msra.mxu2 %v2291_v11 }
  0x26   : > { %2429 = vmatpush.bf16.msra.mxu3 %v2291_v11  ;;  %1274 = vmatpush.bf16.msra.mxu0 %v2291_v11  ;;  %v701_v11 = vpack.c.b16 %v420_v61, %v417_v8  ;;  %v2308_v8 = vld [vmem:[%s3256_s2 + $0x90] sm:$0xff] }
  0x29   : > { %2430 = vmatpush.bf16.msra.mxu1 %v2290_v23  ;;  %2431 = vmatpush.bf16.msra.mxu2 %v2290_v23 }
  0x2a   : > { %2432 = vmatpush.bf16.msra.mxu3 %v2290_v23  ;;  %1275 = vmatpush.bf16.msra.mxu0 %v2290_v23  ;;  %v2317_v23 = vld [vmem:[%s3256_s2 + $0xd8] sm:$0xff] }
  0x2c   : > { %1286 = vmatmul.bf16.vlgmr.msra.gmra.mxu1 %v710_v29  ;;  %1296 = vmatmul.bf16.vlgmr.msra.gmra.mxu2 %v728_v30  ;;  %v2300_v29 = vld [vmem:[%s3256_s2 + $0x50] sm:$0xff] }
  0x2d   : > { %1366 = vmatpush.bf16.msrb.mxu2 %v2313_v27  ;;  %1317 = vmatpush.bf16.msrb.mxu1 %v2305_v28  ;;  %v416_v27 = vunpack.c.l.b16 %v318_v2  ;;  %v419_v28 = vunpack.c.l.b16 %v2714_v7  ;;  %v2353_v2 = vld [vmem:[%s3256_s2 + $0x1f8] sm:$0xff]  ;;  %v2334_v7 = vld [vmem:[%s3256_s2 + $0x160] sm:$0xff] }
  0x2e   : > { %1306 = vmatmul.bf16.vlgmr.msra.gmra.mxu3 %v746_v31  ;;  %1276 = vmatmul.bf16.vlgmr.msra.gmra.mxu0 %v692_v32  ;;  %v2316_v31 = vld [vmem:[%s3256_s2 + $0xd0] sm:$0xff] }
  0x2f   : > { %1415 = vmatpush.bf16.msrb.mxu3 %v2321_v33  ;;  %1464 = vmatpush.bf16.msrb.mxu0 %v2329_v34  ;;  %v2739_v30 = vpack.c.b16 %v419_v28, %v416_v27  ;;  %v2324_v32 = vld [vmem:[%s3256_s2 + $0x110] sm:$0xff]  ;;  %v2307_v33 = vld [vmem:[%s3256_s2 + $0x88] sm:$0xff] }
  0x30   : > { %v2299_v34 = vld [vmem:[%s3256_s2 + $0x48] sm:$0xff] }
  0x31   : > { %1367 = vmatpush.bf16.msrb.mxu2 %v2312_v35  ;;  %1318 = vmatpush.bf16.msrb.mxu1 %v2304_v36  ;;  %v314_v35 = vld [vmem:[%s2548_s30 + $0x8] sm:$0xf] }
  0x32   : > { %v2315_v36 = vld [vmem:[%s3256_s2 + $0xc8] sm:$0xff] }
  0x33   : > { %1416 = vmatpush.bf16.msrb.mxu3 %v2320_v39  ;;  %1465 = vmatpush.bf16.msrb.mxu0 %v2328_v40  ;;  %v2323_v39 = vld [vmem:[%s3256_s2 + $0x108] sm:$0xff]  ;;  %v2306_v40 = vld [vmem:[%s3256_s2 + $0x80] sm:$0xff] }
  0x35   : > { %1368 = vmatpush.bf16.msrb.mxu2 %v2311_v41  ;;  %1319 = vmatpush.bf16.msrb.mxu1 %v2303_v42  ;;  %v2298_v41 = vld [vmem:[%s3256_s2 + $0x40] sm:$0xff]  ;;  %v412_v42 = vunpack.c.h.b16 %v2590_v18 }
  0x36   : > { %v2267_v18 = vld [vmem:[%s2548_s30 + $0x20] sm:$0xf0] }
  0x37   : > { %1417 = vmatpush.bf16.msrb.mxu3 %v2319_v44  ;;  %1466 = vmatpush.bf16.msrb.mxu0 %v2327_v45  ;;  %v413_v44 = vunpack.c.l.b16 %v314_v35  ;;  %v2345_v45 = vld [vmem:[%s3256_s2 + $0x1b8] sm:$0xff] }
  0x39   : > { %1369 = vmatpush.bf16.msrb.mxu2 %v2310_v53  ;;  %1320 = vmatpush.bf16.msrb.mxu1 %v2302_v54  ;;  %v2337_v53 = vld [vmem:[%s3256_s2 + $0x178] sm:$0xff]  ;;  %v2314_v54 = vld [vmem:[%s3256_s2 + $0xc0] sm:$0xff] }
  0x3b   : > { %1418 = vmatpush.bf16.msrb.mxu3 %v2318_v62  ;;  %1467 = vmatpush.bf16.msrb.mxu0 %v2326_v63  ;;  %v2322_v62 = vld [vmem:[%s3256_s2 + $0x100] sm:$0xff]  ;;  %v1879_v63 = vld [vmem:[%s2548_s30 + $0xc] sm:$0xf] }
  0x3c   : > { %1291 = vmatmul.bf16.gmra.mxu1 %v719_v3  ;;  %1301 = vmatmul.bf16.gmra.mxu2 %v737_v4  ;;  %v2361_v3 = vld [vmem:[%s3256_s2 + $0x238] sm:$0xff]  ;;  %v693_v4 = vpack.c.b16 %v415_v37, %v412_v42  ;;  %v2360_v37 = vld [vmem:[%s3256_s2 + $0x230] sm:$0xff] }
  0x3d   : > { %1370 = vmatpush.bf16.msrb.mxu2 %v2309_v0  ;;  %1321 = vmatpush.bf16.msrb.mxu1 %v2301_v1  ;;  %v2266_v0 = vld [vmem:[%s2548_s30 + $0x10] sm:$0xf]  ;;  %v1881_v1 = vld [vmem:[%s2548_s30 + $0x24] sm:$0xf0] }
  0x3e   : > { %1311 = vmatmul.bf16.gmra.mxu3 %v755_v9  ;;  %1281 = vmatmul.bf16.gmra.mxu0 %v701_v11  ;;  %v694_v9 = vpack.c.b16 %v416_v27, %v413_v44  ;;  %v1880_v11 = vor.u32 %v2267_v18, %v1879_v63  ;;  %v2343_v27 = vld [vmem:[%s3256_s2 + $0x1a8] sm:$0xff]  ;;  %v3294_v63 = vunpack.c.h.b16 %v2572_v12  ;;  %v3289_v18 = vunpack.c.h.b16 %v2575_v13 }
  0x3f   : > { %1419 = vmatpush.bf16.msrb.mxu3 %v2317_v23  ;;  %1468 = vmatpush.bf16.msrb.mxu0 %v2325_v26  ;;  %v1884_v23 = vor.u32 %v2266_v0, %v1881_v1  ;;  %v2344_v26 = vld [vmem:[%s3256_s2 + $0x1b0] sm:$0xff] }
  0x41   : > { %1371 = vmatpush.bf16.msrb.mxu2 %v2308_v8  ;;  %1322 = vmatpush.bf16.msrb.mxu1 %v2300_v29  ;;  %v2336_v8 = vld [vmem:[%s3256_s2 + $0x170] sm:$0xff]  ;;  %v2335_v29 = vld [vmem:[%s3256_s2 + $0x168] sm:$0xff] }
  0x43   : > { %1420 = vmatpush.bf16.msrb.mxu3 %v2316_v31  ;;  %1469 = vmatpush.bf16.msrb.mxu0 %v2324_v32  ;;  %v2351_v31 = vld [vmem:[%s3256_s2 + $0x1e8] sm:$0xff] }
  0x44   : > { %v2359_v32 = vld [vmem:[%s3256_s2 + $0x228] sm:$0xff] }
  0x45   : > { %1372 = vmatpush.bf16.msrb.mxu2 %v2307_v33  ;;  %1323 = vmatpush.bf16.msrb.mxu1 %v2299_v34  ;;  %v2816_v33 = vld [vmem:[%s2548_s30 + $0x50] sm:$0xf]  ;;  %v421_v34 = vunpack.c.h.b16 %v2677_v52 }
  0x46   : > { %v3293_v35 = vunpack.c.l.b16 %v2816_v33 }
  0x47   : > { %1421 = vmatpush.bf16.msrb.mxu3 %v2315_v36  ;;  %1470 = vmatpush.bf16.msrb.mxu0 %v2323_v39  ;;  %v1891_v36 = vld [vmem:[%s2548_s30 + $0x3c] sm:$0xf]  ;;  %v2270_v39 = vld [vmem:[%s2548_s30 + $0x50] sm:$0xf0]  ;;  %v702_v42 = vpack.c.b16 %v421_v34, %v418_v38  ;;  %v2350_v38 = vld [vmem:[%s3256_s2 + $0x1e0] sm:$0xff] }
  0x48   : > { %v703_v44 = vpack.c.b16 %v3293_v35, %v419_v28  ;;  %v2358_v28 = vld [vmem:[%s3256_s2 + $0x220] sm:$0xff] }
  0x49   : > { %1373 = vmatpush.bf16.msrb.mxu2 %v2306_v40  ;;  %1324 = vmatpush.bf16.msrb.mxu1 %v2298_v41  ;;  %v2269_v40 = vld [vmem:[%s2548_s30 + $0x40] sm:$0xf]  ;;  %v1893_v41 = vld [vmem:[%s2548_s30 + $0x54] sm:$0xf0] }
  0x4b   : > { %1422 = vmatpush.bf16.msrb.mxu3 %v2314_v54  ;;  %1471 = vmatpush.bf16.msrb.mxu0 %v2322_v62  ;;  %v2845_v54 = vld [vmem:[%s2548_s30 + $0x68] sm:$0xf]  ;;  %v2848_v62 = vld [vmem:[%s2548_s30 + $0x80] sm:$0xf] }
  0x4c   : > { %1325 = vmatmul.bf16.vlgmr.msrb.gmra.mxu1 %v693_v4  ;;  %1374 = vmatmul.bf16.vlgmr.msrb.gmra.mxu2 %v694_v9  ;;  %v3292_v0 = vunpack.c.l.b16 %v2845_v54  ;;  %v3285_v1 = vunpack.c.l.b16 %v2848_v62  ;;  %v2272_v4 = vld [vmem:[%s2548_s30 + $0x70] sm:$0xf]  ;;  %v1905_v9 = vld [vmem:[%s2548_s30 + $0x84] sm:$0xf0] }
  0x4d   : > { %1562 = vmatpush.bf16.msra.mxu2 %v2345_v45  ;;  %1513 = vmatpush.bf16.msra.mxu1 %v2337_v53  ;;  %v1892_v45 = vor.u32 %v2270_v39, %v1891_v36  ;;  %v1896_v53 = vor.u32 %v2269_v40, %v1893_v41  ;;  %v3288_v36 = vunpack.c.h.b16 %v2659_v46  ;;  %v3279_v39 = vunpack.c.h.b16 %v2662_v47 }
  0x4e   : > { %1423 = vmatmul.bf16.vlgmr.msrb.gmra.mxu3 %v1880_v11  ;;  %1472 = vmatmul.bf16.vlgmr.msrb.gmra.mxu0 %v1884_v23  ;;  %v711_v11 = vpack.c.b16 %v3289_v18, %v3294_v63  ;;  %v712_v23 = vpack.c.b16 %v3285_v1, %v3292_v0  ;;  %v2268_v18 = vld [vmem:[%s2548_s30 + $0x28] sm:$0xf0] }
  0x4f   : > { %1611 = vmatpush.bf16.msra.mxu3 %v2353_v2  ;;  %1660 = vmatpush.bf16.msra.mxu0 %v2361_v3  ;;  %v1903_v2 = vld [vmem:[%s2548_s30 + $0x6c] sm:$0xf]  ;;  %v2273_v3 = vld [vmem:[%s2548_s30 + $0x80] sm:$0xf0] }
  0x51   : > { %1563 = vmatpush.bf16.msra.mxu2 %v2344_v26  ;;  %1514 = vmatpush.bf16.msra.mxu1 %v2336_v8  ;;  %v1904_v26 = vor.u32 %v2273_v3, %v1903_v2  ;;  %v1908_v8 = vor.u32 %v2272_v4, %v1905_v9  ;;  %v2340_v2 = vld [vmem:[%s3256_s2 + $0x190] sm:$0xff] }
  0x52   : > { %v2348_v3 = vld [vmem:[%s3256_s2 + $0x1d0] sm:$0xff] }
  0x53   : > { %1612 = vmatpush.bf16.msra.mxu3 %v2352_v5  ;;  %1661 = vmatpush.bf16.msra.mxu0 %v2360_v37  ;;  %v2341_v5 = vld [vmem:[%s3256_s2 + $0x198] sm:$0xff]  ;;  %v2332_v4 = vld [vmem:[%s3256_s2 + $0x150] sm:$0xff] }
  0x54   : > { %v2349_v37 = vld [vmem:[%s3256_s2 + $0x1d8] sm:$0xff]  ;;  %v2356_v9 = vld [vmem:[%s3256_s2 + $0x210] sm:$0xff] }
  0x55   : > { %1564 = vmatpush.bf16.msra.mxu2 %v2343_v27  ;;  %1515 = vmatpush.bf16.msra.mxu1 %v2335_v29  ;;  %v2333_v27 = vld [vmem:[%s3256_s2 + $0x158] sm:$0xff] }
  0x56   : > { %v2357_v29 = vld [vmem:[%s3256_s2 + $0x218] sm:$0xff] }
  0x57   : > { %1613 = vmatpush.bf16.msra.mxu3 %v2351_v31  ;;  %1662 = vmatpush.bf16.msra.mxu0 %v2359_v32  ;;  %v2879_v31 = vld [vmem:[%s2548_s30 + $0x98] sm:$0xf]  ;;  %v2882_v32 = vld [vmem:[%s2548_s30 + $0xb0] sm:$0xf] }
  0x58   : > { %v3282_v40 = vunpack.c.l.b16 %v2879_v31  ;;  %v3277_v41 = vunpack.c.l.b16 %v2882_v32 }
  0x59   : > { %1565 = vmatpush.bf16.msra.mxu2 %v2342_v6  ;;  %1516 = vmatpush.bf16.msra.mxu1 %v2334_v7  ;;  %v720_v6 = vpack.c.b16 %v3279_v39, %v3288_v36  ;;  %v1887_v36 = vld [vmem:[%s2548_s30 + $0x14] sm:$0xf] }
  0x5b   : > { %1614 = vmatpush.bf16.msra.mxu3 %v2350_v38  ;;  %1663 = vmatpush.bf16.msra.mxu0 %v2358_v28  ;;  %v721_v38 = vpack.c.b16 %v3277_v41, %v3282_v40 }
  0x5c   : > { %1330 = vmatmul.bf16.gmra.mxu1 %v702_v42  ;;  %1379 = vmatmul.bf16.gmra.mxu2 %v703_v44  ;;  %v1915_v42 = vld [vmem:[%s2548_s30 + $0x9c] sm:$0xf]  ;;  %v2276_v44 = vld [vmem:[%s2548_s30 + $0xb0] sm:$0xf0] }
  0x5d   : > { %1566 = vmatpush.bf16.msra.mxu2 %v2341_v5  ;;  %1517 = vmatpush.bf16.msra.mxu1 %v2333_v27  ;;  %v1916_v7 = vor.u32 %v2276_v44, %v1915_v42  ;;  %v1927_v27 = vld [vmem:[%s2548_s30 + $0xcc] sm:$0xf]  ;;  %v2278_v42 = vld [vmem:[%s2548_s30 + $0xd0] sm:$0xf]  ;;  %v1929_v44 = vld [vmem:[%s2548_s30 + $0xe4] sm:$0xf0] }
  0x5e   : > { %1428 = vmatmul.bf16.gmra.mxu3 %v1892_v45  ;;  %1477 = vmatmul.bf16.gmra.mxu0 %v1896_v53  ;;  %v2275_v45 = vld [vmem:[%s2548_s30 + $0xa0] sm:$0xf]  ;;  %v1917_v53 = vld [vmem:[%s2548_s30 + $0xb4] sm:$0xf0] }
  0x5f   : > { %1615 = vmatpush.bf16.msra.mxu3 %v2349_v37  ;;  %1664 = vmatpush.bf16.msra.mxu0 %v2357_v29  ;;  %v1920_v28 = vor.u32 %v2275_v45, %v1917_v53  ;;  %v2279_v29 = vld [vmem:[%s2548_s30 + $0xe0] sm:$0xf0] }
  0x61   : > { %1567 = vmatpush.bf16.msra.mxu2 %v2340_v2  ;;  %1518 = vmatpush.bf16.msra.mxu1 %v2332_v4  ;;  %v2941_v2 = vld [vmem:[%s2548_s30 + $0xf8] sm:$0xf]  ;;  %v2331_v4 = vld [vmem:[%s3256_s2 + $0x148] sm:$0xff] }
  0x63   : > { %1616 = vmatpush.bf16.msra.mxu3 %v2348_v3  ;;  %1665 = vmatpush.bf16.msra.mxu0 %v2356_v9  ;;  %v2944_v3 = vld [vmem:[%s2548_s30 + $0x110] sm:$0xf]  ;;  %v2355_v9 = vld [vmem:[%s3256_s2 + $0x208] sm:$0xff] }
  0x65   : > { %1519 = vmatpush.bf16.msra.mxu1 %v2331_v4 }
  0x67   : > { %1666 = vmatpush.bf16.msra.mxu0 %v2355_v9  ;;  %v2338_v9 = vld [vmem:[%s3256_s2 + $0x180] sm:$0xff] }
  0x6c   : > { %1335 = vmatmul.bf16.gmra.mxu1 %v711_v11  ;;  %1384 = vmatmul.bf16.gmra.mxu2 %v712_v23  ;;  %v2913_v11 = vld [vmem:[%s2548_s30 + $0xc8] sm:$0xf]  ;;  %v2916_v23 = vld [vmem:[%s2548_s30 + $0xe0] sm:$0xf] }
  0x6d   : > { %v3276_v5 = vunpack.c.l.b16 %v2913_v11  ;;  %v3271_v37 = vunpack.c.l.b16 %v2916_v23 }
  0x6e   : > { %1433 = vmatmul.bf16.gmra.mxu3 %v1904_v26  ;;  %1482 = vmatmul.bf16.gmra.mxu0 %v1908_v8  ;;  %v3278_v26 = vunpack.c.h.b16 %v2578_v14  ;;  %v3273_v8 = vunpack.c.h.b16 %v2581_v15 }
  0x6f   : > { %v730_v53 = vpack.c.b16 %v3271_v37, %v3276_v5  ;;  %v1963_v37 = vld [vmem:[%s2548_s30 + $0x15c] sm:$0xf] }
  0x70   : > { %v729_v45 = vpack.c.b16 %v3273_v8, %v3278_v26  ;;  %v2287_v8 = vld [vmem:[%s2548_s30 + $0x160] sm:$0xf] }
  0x7c   : > { %1340 = vmatmul.bf16.gmra.mxu1 %v720_v6  ;;  %1389 = vmatmul.bf16.gmra.mxu2 %v721_v38  ;;  %v1928_v6 = vor.u32 %v2279_v29, %v1927_v27  ;;  %v1932_v38 = vor.u32 %v2278_v42, %v1929_v44  ;;  %v3272_v27 = vunpack.c.h.b16 %v2665_v48  ;;  %v3263_v29 = vunpack.c.h.b16 %v2668_v49 }
  0x7d   : > { %v3266_v42 = vunpack.c.l.b16 %v2941_v2  ;;  %v3262_v44 = vunpack.c.l.b16 %v2944_v3 }
  0x7e   : > { %1438 = vmatmul.bf16.gmra.mxu3 %v1916_v7  ;;  %1487 = vmatmul.bf16.gmra.mxu0 %v1920_v28  ;;  %v2339_v7 = vld [vmem:[%s3256_s2 + $0x188] sm:$0xff] }
  0x7f   : > { %v2347_v28 = vld [vmem:[%s3256_s2 + $0x1c8] sm:$0xff]  ;;  %1568 = vmatpush.bf16.msra.mxu2 %v2339_v7  ;;  %v738_v7 = vpack.c.b16 %v3263_v29, %v3272_v27  ;;  %v2288_v27 = vld [vmem:[%s2548_s30 + $0x170] sm:$0xf0] }
  0x80   : > { %1617 = vmatpush.bf16.msra.mxu3 %v2347_v28  ;;  %v739_v28 = vpack.c.b16 %v3262_v44, %v3266_v42  ;;  %v1953_v44 = vld [vmem:[%s2548_s30 + $0x144] sm:$0xf0] }
  0x81   : > { %v1956_v42 = vor.u32 %v2284_v25, %v1953_v44 }
  0x83   : > { %1569 = vmatpush.bf16.msra.mxu2 %v2338_v9  ;;  %v2285_v9 = vld [vmem:[%s2548_s30 + $0x140] sm:$0xf0] }
  0x84   : > { %1618 = vmatpush.bf16.msra.mxu3 %v2346_v59 }
  0x8c   : > { %1345 = vmatmul.bf16.gmra.mxu1 %v729_v45  ;;  %1394 = vmatmul.bf16.gmra.mxu2 %v730_v53  ;;  %v1939_v45 = vld [vmem:[%s2548_s30 + $0xfc] sm:$0xf]  ;;  %v2282_v53 = vld [vmem:[%s2548_s30 + $0x110] sm:$0xf0] }
  0x8d   : > { %v1940_v4 = vor.u32 %v2282_v53, %v1939_v45  ;;  %v2975_v45 = vld [vmem:[%s2548_s30 + $0x128] sm:$0xf]  ;;  %v2978_v53 = vld [vmem:[%s2548_s30 + $0x140] sm:$0xf] }
  0x8e   : > { %1443 = vmatmul.bf16.gmra.mxu3 %v1928_v6  ;;  %1492 = vmatmul.bf16.gmra.mxu0 %v1932_v38  ;;  %v2281_v6 = vld [vmem:[%s2548_s30 + $0x100] sm:$0xf]  ;;  %v1941_v38 = vld [vmem:[%s2548_s30 + $0x114] sm:$0xf0]  ;;  %v3268_v59 = vunpack.c.l.b16 %v2978_v53 }
  0x8f   : > { %v1944_v60 = vor.u32 %v2281_v6, %v1941_v38  ;;  %v2354_v6 = vld [vmem:[%s3256_s2 + $0x200] sm:$0xff]  ;;  %v3270_v38 = vunpack.c.h.b16 %v2584_v16 }
  0x90   : > { %1667 = vmatpush.bf16.msra.mxu0 %v2354_v6 }
  0x9c   : > { %1350 = vmatmul.bf16.gmra.mxu1 %v738_v7  ;;  %1399 = vmatmul.bf16.gmra.mxu2 %v739_v28  ;;  %v3267_v7 = vunpack.c.h.b16 %v2587_v17  ;;  %v3269_v28 = vunpack.c.l.b16 %v2975_v45 }
  0x9e   : > { %1448 = vmatmul.bf16.gmra.mxu3 %v1940_v4  ;;  %1497 = vmatmul.bf16.gmra.mxu0 %v1944_v60  ;;  %v2330_v60 = vld [vmem:[%s3256_s2 + $0x140] sm:$0xff]  ;;  %v1951_v4 = vld [vmem:[%s2548_s30 + $0x12c] sm:$0xf]  ;;  %v748_v29 = vpack.c.b16 %v3268_v59, %v3269_v28 }
  0x9f   : > { %1520 = vmatpush.bf16.msra.mxu1 %v2330_v60  ;;  %v747_v60 = vpack.c.b16 %v3267_v7, %v3270_v38  ;;  %v1952_v58 = vor.u32 %v2285_v9, %v1951_v4  ;;  %v3007_v7 = vld [vmem:[%s3257_s3] ss:$0 sm:$0xff]  ;;  %v3284_v9 = vunpack.c.h.b16 %v2671_v50 }
  0xa9   : > { %v3002_v24 = vpop.f32.mrf.mxu1 }
  0xab   : > { %v1277_v6 = vpop.f32.mrf.mxu0 }
  0xac   : > { %1355 = vmatmul.bf16.gmra.mxu1 %v747_v60  ;;  %1404 = vmatmul.bf16.gmra.mxu2 %v748_v29  ;;  %v3283_v60 = vunpack.c.h.b16 %v2674_v51 }
  0xae   : > { %1453 = vmatmul.bf16.gmra.mxu3 %v1952_v58  ;;  %1502 = vmatmul.bf16.gmra.mxu0 %v1956_v42  ;;  %v3018_v58 = vld [vmem:[%s2548_s30 + $0x158] sm:$0xf]  ;;  %v3021_v42 = vld [vmem:[%s2548_s30 + $0x170] sm:$0xf]  ;;  %v756_v41 = vpack.c.b16 %v3283_v60, %v3284_v9 }
  0xaf   : > { %v1297_v59 = vpop.f32.mrf.mxu2  ;;  %v3287_v38 = vunpack.c.l.b16 %v3018_v58 }
  0xb0   : > { %v3010_v28 = vadd.f32 %v3007_v7, %v1297_v59  ;;  %v3286_v59 = vunpack.c.l.b16 %v3021_v42 }
  0xb1   : > { %v1307_v4 = vpop.f32.mrf.mxu3  ;;  %v3015_v29 = vpop.f32.mrf.mxu1 }
  0xb2   : > { %v3013_v25 = vadd.f32 %v3007_v7, %v1307_v4  ;;  %v1965_v4 = vld [vmem:[%s2548_s30 + $0x174] sm:$0xf0]  ;;  %v757_v26 = vpack.c.b16 %v3286_v59, %v3287_v38 }
  0xb3   : > { %v1279_v44 = vpop.f32.mrf.mxu0  ;;  %v1968_v56 = vor.u32 %v2287_v8, %v1965_v4  ;;  %v1278_v8 = vadd.f32 %v3007_v7, %v1277_v6 }
  0xb7   : > { %v1299_v57 = vpop.f32.mrf.mxu2 }
  0xb8   : > { %v3032_v22 = vadd.f32 %v3007_v7, %v1299_v57  ;;  %v1964_v57 = vor.u32 %v2288_v27, %v1963_v37 }
  0xb9   : > { %v1309_v5 = vpop.f32.mrf.mxu3  ;;  %v3045_v21 = vpop.f32.mrf.mxu1 }
  0xba   : > { %v3043_v39 = vadd.f32 %v3007_v7, %v1309_v5 }
  0xbb   : > { %v1282_v40 = vpop.f32.mrf.mxu0 }
  0xbc   : > { %1360 = vmatmul.bf16.gmra.mxu1 %v756_v41  ;;  %1409 = vmatmul.bf16.gmra.mxu2 %v757_v26  ;;  %v1888_v26 = vor.u32 %v2268_v18, %v1887_v36 }
  0xbe   : > { %1458 = vmatmul.bf16.gmra.mxu3 %v1964_v57  ;;  %1507 = vmatmul.bf16.gmra.mxu0 %v1968_v56  ;;  %v1280_v57 = vadd.f32 %v3007_v7, %v1279_v44 }
  0xbf   : > { %v1302_v60 = vpop.f32.mrf.mxu2 }
  0xc0   : > { %v3048_v9 = vadd.f32 %v3007_v7, %v1302_v60 }
  0xc1   : > { %v1312_v1 = vpop.f32.mrf.mxu3  ;;  %v3053_v5 = vpop.f32.mrf.mxu1 }
  0xc2   : > { %v3051_v59 = vadd.f32 %v3007_v7, %v1312_v1 }
  0xc3   : > { %v1284_v38 = vpop.f32.mrf.mxu0 }
  0xc7   : > { %v1304_v37 = vpop.f32.mrf.mxu2 }
  0xc8   : > { %v3059_v41 = vadd.f32 %v3007_v7, %v1304_v37 }
  0xc9   : > { %v1314_v56 = vpop.f32.mrf.mxu3  ;;  %v1326_v60 = vpop.f32.mrf.mxu1 }
  0xca   : > { %v3062_v27 = vadd.f32 %v3007_v7, %v1314_v56  ;;  %v1327_v1 = vadd.f32 %v1326_v60, %v1278_v8  ;;  %v1899_v8 = vld [vmem:[%s2548_s30 + $0x44] sm:$0xf]  ;;  %v2271_v60 = vld [vmem:[%s2548_s30 + $0x58] sm:$0xf0] }
  0xcb   : > { %v1473_v4 = vpop.f32.mrf.mxu0  ;;  %v1900_v63 = vor.u32 %v2271_v60, %v1899_v8  ;;  %v1911_v8 = vld [vmem:[%s2548_s30 + $0x74] sm:$0xf]  ;;  %v2274_v60 = vld [vmem:[%s2548_s30 + $0x88] sm:$0xf0] }
  0xcc   : > { %1521 = vmatmul.bf16.vlgmr.msra.gmra.mxu1 %v1888_v26  ;;  %1570 = vmatmul.bf16.vlgmr.msra.gmra.mxu2 %v2566_v10  ;;  %v1283_v10 = vadd.f32 %v3007_v7, %v1282_v40 }
  0xce   : > { %1619 = vmatmul.bf16.vlgmr.msra.gmra.mxu3 %v2650_v43  ;;  %1668 = vmatmul.bf16.vlgmr.msra.gmra.mxu0 %v2739_v30  ;;  %v707_v30 = vpack.c.b16 %v423_v19, %v420_v61 }
  0xcf   : > { %v1375_v6 = vpop.f32.mrf.mxu2 }
  0xd0   : > { %v1376_v37 = vadd.f32 %v1375_v6, %v1327_v1  ;;  %v3295_v1 = vunpack.c.h.b16 %v2572_v12  ;;  %v3296_v6 = vunpack.c.l.b16 %v2816_v33  ;;  %v1285_v12 = vadd.f32 %v3007_v7, %v1284_v38 }
  0xd1   : > { %v1424_v18 = vpop.f32.mrf.mxu3  ;;  %v1328_v36 = vpop.f32.mrf.mxu1  ;;  %v3299_v38 = vunpack.c.l.b16 %v2659_v46 }
  0xd2   : > { %v1425_v56 = vadd.f32 %v1424_v18, %v1376_v37  ;;  %v1329_v55 = vadd.f32 %v1328_v36, %v1280_v57  ;;  %v3297_v57 = vunpack.c.l.b16 %v2845_v54 }
  0xd3   : > { %v1475_v20 = vpop.f32.mrf.mxu0 }
  0xd4   : > { %v3068_v0 = vadd.f32 %v1473_v4, %v1425_v56  ;;  %v708_v4 = vpack.c.b16 %v3295_v1, %v421_v34  ;;  %v709_v37 = vpack.c.b16 %v3297_v57, %v3296_v6  ;;  %v3301_v6 = vunpack.c.h.b16 %v2659_v46 }
  0xd5   : > { %v1290_v46 = vadd.f32 %v3007_v7, %v3015_v29  ;;  %v3305_v29 = vunpack.c.l.b16 %v2578_v14 }
  0xd7   : > { %v1377_v26 = vpop.f32.mrf.mxu2 }
  0xd8   : > { %v1378_v35 = vadd.f32 %v1377_v26, %v1329_v55 }
  0xd9   : > { %v1426_v43 = vpop.f32.mrf.mxu3  ;;  %v1331_v44 = vpop.f32.mrf.mxu1 }
  0xda   : > { %v1427_v40 = vadd.f32 %v1426_v43, %v1378_v35  ;;  %v1332_v55 = vadd.f32 %v1331_v44, %v1283_v10  ;;  %v1912_v43 = vor.u32 %v2274_v60, %v1911_v8  ;;  %v1923_v8 = vld [vmem:[%s2548_s30 + $0xa4] sm:$0xf]  ;;  %v2277_v60 = vld [vmem:[%s2548_s30 + $0xb8] sm:$0xf0] }
  0xdb   : > { %v1478_v18 = vpop.f32.mrf.mxu0 }
  0xdc   : > { %1526 = vmatmul.bf16.gmra.mxu1 %v1900_v63  ;;  %1575 = vmatmul.bf16.gmra.mxu2 %v707_v30  ;;  %v3085_v36 = vadd.f32 %v1475_v20, %v1427_v40  ;;  %v1288_v20 = vadd.f32 %v3007_v7, %v3002_v24  ;;  %v3298_v30 = vunpack.c.l.b16 %v2575_v13  ;;  %v3303_v40 = vunpack.c.l.b16 %v2879_v31 }
  0xde   : > { %1624 = vmatmul.bf16.gmra.mxu3 %v708_v4  ;;  %1673 = vmatmul.bf16.gmra.mxu0 %v709_v37  ;;  %v716_v44 = vpack.c.b16 %v3299_v38, %v3298_v30  ;;  %v3300_v4 = vunpack.c.h.b16 %v2575_v13  ;;  %v3302_v37 = vunpack.c.l.b16 %v2848_v62 }
  0xdf   : > { %v1380_v19 = vpop.f32.mrf.mxu2 }
  0xe0   : > { %v1381_v52 = vadd.f32 %v1380_v19, %v1332_v55  ;;  %v717_v57 = vpack.c.b16 %v3301_v6, %v3300_v4  ;;  %v718_v55 = vpack.c.b16 %v3303_v40, %v3302_v37  ;;  %v3308_v6 = vunpack.c.l.b16 %v2882_v32 }
  0xe1   : > { %v1429_v61 = vpop.f32.mrf.mxu3  ;;  %v1333_v33 = vpop.f32.mrf.mxu1 }
  0xe2   : > { %v1430_v34 = vadd.f32 %v1429_v61, %v1381_v52  ;;  %v1334_v54 = vadd.f32 %v1333_v33, %v1285_v12 }
  0xe3   : > { %v1480_v56 = vpop.f32.mrf.mxu0 }
  0xe4   : > { %v3088_v35 = vadd.f32 %v1478_v18, %v1430_v34 }
  0xe7   : > { %v1382_v26 = vpop.f32.mrf.mxu2 }
  0xe8   : > { %v1383_v63 = vadd.f32 %v1382_v26, %v1334_v54 }
  0xe9   : > { %v1431_v10 = vpop.f32.mrf.mxu3  ;;  %v1336_v1 = vpop.f32.mrf.mxu1 }
  0xea   : > { %v1432_v24 = vadd.f32 %v1431_v10, %v1383_v63  ;;  %v1337_v18 = vadd.f32 %v1336_v1, %v1288_v20  ;;  %v1924_v10 = vor.u32 %v2277_v60, %v1923_v8  ;;  %v3307_v1 = vunpack.c.h.b16 %v2578_v14 }
  0xeb   : > { %v1483_v19 = vpop.f32.mrf.mxu0  ;;  %v1295_v14 = vadd.f32 %v3007_v7, %v3053_v5  ;;  %v3310_v60 = vunpack.c.l.b16 %v2581_v15  ;;  %v3312_v5 = vunpack.c.h.b16 %v2581_v15 }
  0xec   : > { %1531 = vmatmul.bf16.gmra.mxu1 %v1912_v43  ;;  %1580 = vmatmul.bf16.gmra.mxu2 %v716_v44  ;;  %v3106_v12 = vadd.f32 %v1480_v56, %v1432_v24  ;;  %v1293_v56 = vadd.f32 %v3007_v7, %v3045_v21  ;;  %v3304_v43 = vunpack.c.l.b16 %v2662_v47  ;;  %v3306_v44 = vunpack.c.h.b16 %v2662_v47 }
  0xee   : > { %1629 = vmatmul.bf16.gmra.mxu3 %v717_v57  ;;  %1678 = vmatmul.bf16.gmra.mxu0 %v718_v55  ;;  %v725_v30 = vpack.c.b16 %v3305_v29, %v3304_v43  ;;  %v726_v4 = vpack.c.b16 %v3307_v1, %v3306_v44  ;;  %v3309_v57 = vunpack.c.l.b16 %v2913_v11  ;;  %v3315_v43 = vunpack.c.l.b16 %v2941_v2 }
  0xef   : > { %v1385_v13 = vpop.f32.mrf.mxu2 }
  0xf0   : > { %v1386_v52 = vadd.f32 %v1385_v13, %v1337_v18  ;;  %v727_v37 = vpack.c.b16 %v3309_v57, %v3308_v6 }
  0xf1   : > { %v1434_v62 = vpop.f32.mrf.mxu3  ;;  %v1338_v61 = vpop.f32.mrf.mxu1 }
  0xf2   : > { %v1435_v31 = vadd.f32 %v1434_v62, %v1386_v52  ;;  %v1339_v33 = vadd.f32 %v1338_v61, %v1290_v46  ;;  %v1935_v62 = vld [vmem:[%s2548_s30 + $0xd4] sm:$0xf]  ;;  %v2280_v61 = vld [vmem:[%s2548_s30 + $0xe8] sm:$0xf0] }
  0xf3   : > { %v1485_v34 = vpop.f32.mrf.mxu0  ;;  %v1936_v8 = vor.u32 %v2280_v61, %v1935_v62  ;;  %v3320_v62 = vunpack.c.l.b16 %v2944_v3  ;;  %v3321_v61 = vunpack.c.l.b16 %v2975_v45 }
  0xf4   : > { %v3110_v54 = vadd.f32 %v1483_v19, %v1435_v31 }
  0xf7   : > { %v1387_v26 = vpop.f32.mrf.mxu2 }
  0xf8   : > { %v1388_v20 = vadd.f32 %v1387_v26, %v1339_v33  ;;  %v3311_v26 = vunpack.c.l.b16 %v2665_v48 }
  0xf9   : > { %v1436_v63 = vpop.f32.mrf.mxu3  ;;  %v1341_v38 = vpop.f32.mrf.mxu1 }
  0xfa   : > { %v1437_v21 = vadd.f32 %v1436_v63, %v1388_v20  ;;  %v1342_v40 = vadd.f32 %v1341_v38, %v1293_v56  ;;  %v734_v56 = vpack.c.b16 %v3311_v26, %v3310_v60  ;;  %v3313_v20 = vunpack.c.h.b16 %v2665_v48 }
  0xfb   : > { %v1488_v55 = vpop.f32.mrf.mxu0 }
  0xfc   : > { %1536 = vmatmul.bf16.gmra.mxu1 %v1924_v10  ;;  %1585 = vmatmul.bf16.gmra.mxu2 %v725_v30  ;;  %v3128_v24 = vadd.f32 %v1485_v34, %v1437_v21  ;;  %v735_v63 = vpack.c.b16 %v3313_v20, %v3312_v5  ;;  %v3314_v10 = vunpack.c.l.b16 %v2916_v23  ;;  %v1947_v21 = vld [vmem:[%s2548_s30 + $0x104] sm:$0xf]  ;;  %v2286_v20 = vld [vmem:[%s2548_s30 + $0x148] sm:$0xf0] }
  0xfe   : > { %1634 = vmatmul.bf16.gmra.mxu3 %v726_v4  ;;  %1683 = vmatmul.bf16.gmra.mxu0 %v727_v37  ;;  %v736_v29 = vpack.c.b16 %v3315_v43, %v3314_v10 }
  0xff   : > { %v1390_v47 = vpop.f32.mrf.mxu2 }
 0x100   : > { %v1391_v18 = vadd.f32 %v1390_v47, %v1342_v40 }
 0x101   : > { %v1439_v32 = vpop.f32.mrf.mxu3  ;;  %v1343_v19 = vpop.f32.mrf.mxu1 }
 0x102   : > { %v1440_v11 = vadd.f32 %v1439_v32, %v1391_v18  ;;  %v1344_v13 = vadd.f32 %v1343_v19, %v1295_v14  ;;  %v3316_v18 = vunpack.c.l.b16 %v2668_v49  ;;  %v3317_v32 = vunpack.c.l.b16 %v2584_v16 }
 0x103   : > { %v1490_v46 = vpop.f32.mrf.mxu0 }
 0x104   : > { %v3132_v52 = vadd.f32 %v1488_v55, %v1440_v11  ;;  %v743_v19 = vpack.c.b16 %v3317_v32, %v3316_v18  ;;  %v378_v18 = vld [vmem:[%s300_s6 + $0x8] sm:$0xf] }
 0x107   : > { %v1392_v31 = vpop.f32.mrf.mxu2 }
 0x108   : > { %v1393_v33 = vadd.f32 %v1392_v31, %v1344_v13  ;;  %v3318_v13 = vunpack.c.h.b16 %v2668_v49  ;;  %v745_v31 = vpack.c.b16 %v3321_v61, %v3320_v62 }
 0x109   : > { %v1441_v34 = vpop.f32.mrf.mxu3  ;;  %v1346_v7 = vpop.f32.mrf.mxu1 }
 0x10a   : > { %v1442_v30 = vadd.f32 %v1441_v34, %v1393_v33  ;;  %v1347_v38 = vadd.f32 %v1346_v7, %v3010_v28  ;;  %v2283_v28 = vld [vmem:[%s2548_s30 + $0x118] sm:$0xf0] }
 0x10b   : > { %v1493_v44 = vpop.f32.mrf.mxu0  ;;  %v1948_v14 = vor.u32 %v2283_v28, %v1947_v21 }
 0x10c   : > { %1541 = vmatmul.bf16.gmra.mxu1 %v1936_v8  ;;  %1590 = vmatmul.bf16.gmra.mxu2 %v734_v56  ;;  %v3149_v1 = vadd.f32 %v1490_v46, %v1442_v30  ;;  %v3319_v46 = vunpack.c.h.b16 %v2584_v16  ;;  %v3322_v30 = vunpack.c.l.b16 %v2587_v17 }
 0x10e   : > { %1639 = vmatmul.bf16.gmra.mxu3 %v735_v63  ;;  %1688 = vmatmul.bf16.gmra.mxu0 %v736_v29 }
 0x10f   : > { %v1395_v15 = vpop.f32.mrf.mxu2 }
 0x110   : > { %v1396_v48 = vadd.f32 %v1395_v15, %v1347_v38  ;;  %v3323_v38 = vunpack.c.l.b16 %v2671_v50 }
 0x111   : > { %v1444_v4 = vpop.f32.mrf.mxu3  ;;  %v1348_v6 = vpop.f32.mrf.mxu1 }
 0x112   : > { %v1445_v23 = vadd.f32 %v1444_v4, %v1396_v48  ;;  %v1349_v2 = vadd.f32 %v1348_v6, %v3032_v22  ;;  %v744_v22 = vpack.c.b16 %v3319_v46, %v3318_v13  ;;  %v3324_v48 = vunpack.c.h.b16 %v2587_v17  ;;  %v2289_v13 = vld [vmem:[%s2548_s30 + $0x178] sm:$0xf0] }
 0x113   : > { %v1495_v57 = vpop.f32.mrf.mxu0  ;;  %v3326_v6 = vunpack.c.l.b16 %v2978_v53 }
 0x114   : > { %v3152_v37 = vadd.f32 %v1493_v44, %v1445_v23  ;;  %v752_v44 = vpack.c.b16 %v3323_v38, %v3322_v30  ;;  %v3327_v23 = vunpack.c.l.b16 %v3018_v58 }
 0x117   : > { %v1397_v40 = vpop.f32.mrf.mxu2 }
 0x118   : > { %v1398_v55 = vadd.f32 %v1397_v40, %v1349_v2  ;;  %v754_v2 = vpack.c.b16 %v3327_v23, %v3326_v6 }
 0x119   : > { %v1446_v47 = vpop.f32.mrf.mxu3  ;;  %v1351_v11 = vpop.f32.mrf.mxu1 }
 0x11a   : > { %v1447_v33 = vadd.f32 %v1446_v47, %v1398_v55  ;;  %v1352_v34 = vadd.f32 %v1351_v11, %v3048_v9  ;;  %v1959_v9 = vld [vmem:[%s2548_s30 + $0x134] sm:$0xf]  ;;  %v1971_v11 = vld [vmem:[%s2548_s30 + $0x164] sm:$0xf] }
 0x11b   : > { %v1498_v8 = vpop.f32.mrf.mxu0  ;;  %v1960_v29 = vor.u32 %v2286_v20, %v1959_v9 }
 0x11c   : > { %1546 = vmatmul.bf16.gmra.mxu1 %v1948_v14  ;;  %1595 = vmatmul.bf16.gmra.mxu2 %v743_v19  ;;  %v3169_v60 = vadd.f32 %v1495_v57, %v1447_v33  ;;  %v1972_v33 = vor.u32 %v2289_v13, %v1971_v11 }
 0x11e   : > { %1644 = vmatmul.bf16.gmra.mxu3 %v744_v22  ;;  %1693 = vmatmul.bf16.gmra.mxu0 %v745_v31  ;;  %v543_v22 = vunpack.c.l.b16 %v378_v18 }
 0x11f   : > { %v1400_v49 = vpop.f32.mrf.mxu2 }
 0x120   : > { %v1401_v16 = vadd.f32 %v1400_v49, %v1352_v34  ;;  %v3328_v34 = vunpack.c.l.b16 %v2674_v51 }
 0x121   : > { %v1449_v26 = vpop.f32.mrf.mxu3  ;;  %v1353_v56 = vpop.f32.mrf.mxu1 }
 0x122   : > { %v1450_v3 = vadd.f32 %v1449_v26, %v1401_v16  ;;  %v1354_v45 = vadd.f32 %v1353_v56, %v3059_v41  ;;  %v3325_v41 = vunpack.c.h.b16 %v2671_v50  ;;  %v3329_v16 = vunpack.c.h.b16 %v2674_v51 }
 0x123   : > { %v1500_v7 = vpop.f32.mrf.mxu0  ;;  %v3330_v26 = vunpack.c.l.b16 %v3021_v42 }
 0x124   : > { %v3172_v5 = vadd.f32 %v1498_v8, %v1450_v3  ;;  %v753_v4 = vpack.c.b16 %v3325_v41, %v3324_v48 }
 0x125   : > { %v763_v56 = vpack.c.b16 %v543_v22, %v3330_v26 }
 0x127   : > { %v1402_v63 = vpop.f32.mrf.mxu2 }
 0x128   : > { %v1403_v10 = vadd.f32 %v1402_v63, %v1354_v45 }
 0x129   : > { %v1451_v43 = vpop.f32.mrf.mxu3  ;;  %v1356_v15 = vpop.f32.mrf.mxu1 }
 0x12a   : > { %v1452_v57 = vadd.f32 %v1451_v43, %v1403_v10  ;;  %v1357_v21 = vadd.f32 %v1356_v15, %v3013_v25  ;;  %v377_v25 = vld [vmem:[%s300_s6] sm:$0xff] }
 0x12b   : > { %v1503_v28 = vpop.f32.mrf.mxu0  ;;  %v541_v32 = vunpack.c.l.b16 %v377_v25  ;;  %v542_v46 = vunpack.c.h.b16 %v377_v25 }
 0x12c   : > { %1551 = vmatmul.bf16.gmra.mxu1 %v1960_v29  ;;  %1600 = vmatmul.bf16.gmra.mxu2 %v752_v44  ;;  %v3191_v40 = vadd.f32 %v1500_v7, %v1452_v57 }
 0x12d   : > { %v761_v8 = vpack.c.b16 %v541_v32, %v3328_v34 }
 0x12e   : > { %1649 = vmatmul.bf16.gmra.mxu3 %v753_v4  ;;  %1698 = vmatmul.bf16.gmra.mxu0 %v754_v2 }
 0x12f   : > { %v1405_v17 = vpop.f32.mrf.mxu2 }
 0x130   : > { %v1406_v50 = vadd.f32 %v1405_v17, %v1357_v21 }
 0x131   : > { %v1454_v53 = vpop.f32.mrf.mxu3  ;;  %v1358_v58 = vpop.f32.mrf.mxu1 }
 0x132   : > { %v1455_v55 = vadd.f32 %v1454_v53, %v1406_v50  ;;  %v1359_v47 = vadd.f32 %v1358_v58, %v3043_v39  ;;  %v762_v39 = vpack.c.b16 %v542_v46, %v3329_v16 }
 0x133   : > { %v1505_v14 = vpop.f32.mrf.mxu0 }
 0x134   : > { %v3197_v19 = vadd.f32 %v1503_v28, %v1455_v55 }
 0x137   : > { %v1407_v62 = vpop.f32.mrf.mxu2 }
 0x138   : > { %v1408_v61 = vadd.f32 %v1407_v62, %v1359_v47 }
 0x139   : > { %v1456_v31 = vpop.f32.mrf.mxu3  ;;  %v1361_v49 = vpop.f32.mrf.mxu1 }
 0x13a   : > { %v1457_v3 = vadd.f32 %v1456_v31, %v1408_v61  ;;  %v1362_v45 = vadd.f32 %v1361_v49, %v3051_v59 }
 0x13b   : > { %v1508_v7 = vpop.f32.mrf.mxu0 }
 0x13c   : > { %1556 = vmatmul.bf16.gmra.mxu1 %v1972_v33  ;;  %1605 = vmatmul.bf16.gmra.mxu2 %v761_v8  ;;  %v3208_v9 = vadd.f32 %v1505_v14, %v1457_v3 }
 0x13e   : > { %1654 = vmatmul.bf16.gmra.mxu3 %v762_v39  ;;  %1703 = vmatmul.bf16.gmra.mxu0 %v763_v56 }
 0x13f   : > { %v1410_v20 = vpop.f32.mrf.mxu2 }
 0x140   : > { %v1411_v63 = vadd.f32 %v1410_v20, %v1362_v45 }
 0x141   : > { %v1459_v10 = vpop.f32.mrf.mxu3  ;;  %v1363_v43 = vpop.f32.mrf.mxu1 }
 0x142   : > { %v1460_v29 = vadd.f32 %v1459_v10, %v1411_v63  ;;  %v1364_v51 = vadd.f32 %v1363_v43, %v3062_v27 }
 0x143   : > { %v1510_v30 = vpop.f32.mrf.mxu0 }
 0x144   : > { %v3211_v42 = vadd.f32 %v1508_v7, %v1460_v29 }
 0x147   : > { %v1412_v38 = vpop.f32.mrf.mxu2 }
 0x148   : > { %v1413_v44 = vadd.f32 %v1412_v38, %v1364_v51 }
 0x149   : > { %v1461_v59 = vpop.f32.mrf.mxu3  ;;  %v1522_v15 = vpop.f32.mrf.mxu1 }
 0x14a   : > { %v1462_v48 = vadd.f32 %v1461_v59, %v1413_v44  ;;  %v1523_v23 = vadd.f32 %v1522_v15, %v3068_v0 }
 0x14b   : > { %v1669_v41 = vpop.f32.mrf.mxu0 }
 0x14c   : > { %v3213_v4 = vadd.f32 %v1510_v30, %v1462_v48 }
 0x14f   : > { %v1571_v6 = vpop.f32.mrf.mxu2 }
 0x150   : > { %v1572_v21 = vadd.f32 %v1571_v6, %v1523_v23 }
 0x151   : > { %v1620_v2 = vpop.f32.mrf.mxu3  ;;  %v1524_v57 = vpop.f32.mrf.mxu1 }
 0x152   : > { %v1621_v27 = vadd.f32 %v1620_v2, %v1572_v21  ;;  %v1525_v17 = vadd.f32 %v1524_v57, %v3085_v36 }
 0x153   : > { %v1671_v28 = vpop.f32.mrf.mxu0 }
 0x154   : > { %v1670_v55 = vadd.f32 %v1669_v41, %v1621_v27 }
 0x156   : > { %v1709_v32 = vmax.f32 %v1670_v55, 0.0 }
 0x157   : > { %v1573_v50 = vpop.f32.mrf.mxu2 }
 0x158   : > { %v1574_v53 = vadd.f32 %v1573_v50, %v1525_v17 }
 0x159   : > { %v1622_v58 = vpop.f32.mrf.mxu3  ;;  %v1527_v25 = vpop.f32.mrf.mxu1 }
 0x15a   : > { %v1623_v47 = vadd.f32 %v1622_v58, %v1574_v53  ;;  %v1528_v36 = vadd.f32 %v1527_v25, %v3088_v35 }
 0x15b   : > { %v1674_v14 = vpop.f32.mrf.mxu0 }
 0x15c   : > { %v1672_v18 = vadd.f32 %v1671_v28, %v1623_v47 }
 0x15e   : > { %v1710_v11 = vmax.f32 %v1672_v18, 0.0 }
 0x15f   : > { %v1576_v0 = vpop.f32.mrf.mxu2 }
 0x160   : > { %v2365_v13 = vpack.c.bf16 %v1710_v11, %v1709_v32  ;;  %v1577_v62 = vadd.f32 %v1576_v0, %v1528_v36 }
 0x161   : > { %v1625_v46 = vpop.f32.mrf.mxu3  ;;  %v1529_v22 = vpop.f32.mrf.mxu1 }
 0x162   : > { %2366 = vst [vmem:[%s3221_s8] sm:$0xff] %v2365_v13   ;;  %v1626_v31 = vadd.f32 %v1625_v46, %v1577_v62  ;;  %v1530_v33 = vadd.f32 %v1529_v22, %v3106_v12 }
 0x163   : > { %v1676_v61 = vpop.f32.mrf.mxu0 }
 0x164   : > { %v1675_v39 = vadd.f32 %v1674_v14, %v1626_v31 }
 0x166   : > { %v1711_v45 = vmax.f32 %v1675_v39, 0.0 }
 0x167   : > { %v1578_v34 = vpop.f32.mrf.mxu2 }
 0x168   : > { %v1579_v8 = vadd.f32 %v1578_v34, %v1530_v33 }
 0x169   : > { %v1627_v49 = vpop.f32.mrf.mxu3  ;;  %v1532_v16 = vpop.f32.mrf.mxu1 }
 0x16a   : > { %v1628_v26 = vadd.f32 %v1627_v49, %v1579_v8  ;;  %v1533_v63 = vadd.f32 %v1532_v16, %v3110_v54 }
 0x16b   : > { %v1679_v56 = vpop.f32.mrf.mxu0 }
 0x16c   : > { %v1677_v3 = vadd.f32 %v1676_v61, %v1628_v26 }
 0x16e   : > { %v1712_v7 = vmax.f32 %v1677_v3, 0.0 }
 0x16f   : > { %v1581_v35 = vpop.f32.mrf.mxu2 }
 0x170   : > { %v2370_v20 = vpack.c.bf16 %v1712_v7, %v1711_v45  ;;  %v1582_v29 = vadd.f32 %v1581_v35, %v1533_v63 }
 0x171   : > { %v1630_v10 = vpop.f32.mrf.mxu3  ;;  %v1534_v43 = vpop.f32.mrf.mxu1 }
 0x172   : > { %2402 = vst [vmem:[%s3221_s8 + $0x8] sm:$0xff] %v2370_v20   ;;  %v1631_v51 = vadd.f32 %v1630_v10, %v1582_v29  ;;  %v1535_v30 = vadd.f32 %v1534_v43, %v3128_v24 }
 0x173   : > { %v1681_v12 = vpop.f32.mrf.mxu0 }
 0x174   : > { %v1680_v48 = vadd.f32 %v1679_v56, %v1631_v51 }
 0x176   : > { %v1713_v2 = vmax.f32 %v1680_v48, 0.0 }
 0x177   : > { %v1583_v38 = vpop.f32.mrf.mxu2 }
 0x178   : > { %v1584_v44 = vadd.f32 %v1583_v38, %v1535_v30 }
 0x179   : > { %v1632_v59 = vpop.f32.mrf.mxu3  ;;  %v1537_v15 = vpop.f32.mrf.mxu1 }
 0x17a   : > { %v1633_v41 = vadd.f32 %v1632_v59, %v1584_v44  ;;  %v1538_v28 = vadd.f32 %v1537_v15, %v3132_v52 }
 0x17b   : > { %v1684_v6 = vpop.f32.mrf.mxu0 }
 0x17c   : > { %v1682_v23 = vadd.f32 %v1681_v12, %v1633_v41 }
 0x17e   : > { %v1714_v57 = vmax.f32 %v1682_v23, 0.0 }
 0x17f   : > { %v1586_v54 = vpop.f32.mrf.mxu2 }
 0x180   : > { %v2375_v21 = vpack.c.bf16 %v1714_v57, %v1713_v2  ;;  %v1587_v50 = vadd.f32 %v1586_v54, %v1538_v28 }
 0x181   : > { %v1635_v27 = vpop.f32.mrf.mxu3  ;;  %v1539_v17 = vpop.f32.mrf.mxu1 }
 0x182   : > { %2403 = vst [vmem:[%s3221_s8 + $0x10] sm:$0xff] %v2375_v21   ;;  %v1636_v53 = vadd.f32 %v1635_v27, %v1587_v50  ;;  %v1540_v58 = vadd.f32 %v1539_v17, %v3149_v1 }
 0x183   : > { %v1686_v24 = vpop.f32.mrf.mxu0 }
 0x184   : > { %v1685_v18 = vadd.f32 %v1684_v6, %v1636_v53 }
 0x186   : > { %v1715_v13 = vmax.f32 %v1685_v18, 0.0 }
 0x187   : > { %v1588_v25 = vpop.f32.mrf.mxu2 }
 0x188   : > { %v1589_v55 = vadd.f32 %v1588_v25, %v1540_v58 }
 0x189   : > { %v1637_v47 = vpop.f32.mrf.mxu3  ;;  %v1542_v14 = vpop.f32.mrf.mxu1 }
 0x18a   : > { %v1638_v32 = vadd.f32 %v1637_v47, %v1589_v55  ;;  %v1543_v22 = vadd.f32 %v1542_v14, %v3152_v37 }
 0x18b   : > { %v1689_v11 = vpop.f32.mrf.mxu0 }
 0x18c   : > { %v1687_v0 = vadd.f32 %v1686_v24, %v1638_v32 }
 0x18e   : > { %v1716_v36 = vmax.f32 %v1687_v0, 0.0 }
 0x18f   : > { %v1591_v52 = vpop.f32.mrf.mxu2 }
 0x190   : > { %v2380_v46 = vpack.c.bf16 %v1716_v36, %v1715_v13  ;;  %v1592_v31 = vadd.f32 %v1591_v52, %v1543_v22 }
 0x191   : > { %v1640_v62 = vpop.f32.mrf.mxu3  ;;  %v1544_v61 = vpop.f32.mrf.mxu1 }
 0x192   : > { %2404 = vst [vmem:[%s3221_s8 + $0x18] sm:$0xff] %v2380_v46   ;;  %v1641_v33 = vadd.f32 %v1640_v62, %v1592_v31  ;;  %v1545_v34 = vadd.f32 %v1544_v61, %v3169_v60 }
 0x193   : > { %v1691_v1 = vpop.f32.mrf.mxu0 }
 0x194   : > { %v1690_v26 = vadd.f32 %v1689_v11, %v1641_v33 }
 0x196   : > { %v1717_v7 = vmax.f32 %v1690_v26, 0.0 }
 0x197   : > { %v1593_v8 = vpop.f32.mrf.mxu2 }
 0x198   : > { %v1594_v49 = vadd.f32 %v1593_v8, %v1545_v34 }
 0x199   : > { %v1642_v16 = vpop.f32.mrf.mxu3  ;;  %v1547_v39 = vpop.f32.mrf.mxu1 }
 0x19a   : > { %v1643_v56 = vadd.f32 %v1642_v16, %v1594_v49  ;;  %v1548_v63 = vadd.f32 %v1547_v39, %v3172_v5 }
 0x19b   : > { %v1694_v3 = vpop.f32.mrf.mxu0 }
 0x19c   : > { %v1692_v45 = vadd.f32 %v1691_v1, %v1643_v56 }
 0x19e   : > { %v1718_v35 = vmax.f32 %v1692_v45, 0.0 }
 0x19f   : > { %v1596_v37 = vpop.f32.mrf.mxu2 }
 0x1a0   : > { %v2385_v20 = vpack.c.bf16 %v1718_v35, %v1717_v7  ;;  %v1597_v29 = vadd.f32 %v1596_v37, %v1548_v63 }
 0x1a1   : > { %v1645_v10 = vpop.f32.mrf.mxu3  ;;  %v1549_v43 = vpop.f32.mrf.mxu1 }
 0x1a2   : > { %2405 = vst [vmem:[%s3221_s8 + $0x20] sm:$0xff] %v2385_v20   ;;  %v1646_v12 = vadd.f32 %v1645_v10, %v1597_v29  ;;  %v1550_v51 = vadd.f32 %v1549_v43, %v3191_v40 }
 0x1a3   : > { %v1696_v60 = vpop.f32.mrf.mxu0 }
 0x1a4   : > { %v1695_v15 = vadd.f32 %v1694_v3, %v1646_v12 }
 0x1a6   : > { %v1719_v23 = vmax.f32 %v1695_v15, 0.0 }
 0x1a7   : > { %v1598_v30 = vpop.f32.mrf.mxu2 }
 0x1a8   : > { %v1599_v38 = vadd.f32 %v1598_v30, %v1550_v51 }
 0x1a9   : > { %v1647_v44 = vpop.f32.mrf.mxu3  ;;  %v1552_v59 = vpop.f32.mrf.mxu1 }
 0x1aa   : > { %v1648_v48 = vadd.f32 %v1647_v44, %v1599_v38  ;;  %v1553_v54 = vadd.f32 %v1552_v59, %v3197_v19 }
 0x1ab   : > { %v1699_v6 = vpop.f32.mrf.mxu0 }
 0x1ac   : > { %v1697_v41 = vadd.f32 %v1696_v60, %v1648_v48 }
 0x1ae   : > { %v1720_v2 = vmax.f32 %v1697_v41, 0.0 }
 0x1af   : > { %v1601_v5 = vpop.f32.mrf.mxu2 }
 0x1b0   : > { %v2390_v57 = vpack.c.bf16 %v1720_v2, %v1719_v23  ;;  %v1602_v27 = vadd.f32 %v1601_v5, %v1553_v54 }
 0x1b1   : > { %v1650_v21 = vpop.f32.mrf.mxu3  ;;  %v1554_v28 = vpop.f32.mrf.mxu1 }
 0x1b2   : > { %2406 = vst [vmem:[%s3221_s8 + $0x28] sm:$0xff] %v2390_v57   ;;  %v1651_v40 = vadd.f32 %v1650_v21, %v1602_v27  ;;  %v1555_v17 = vadd.f32 %v1554_v28, %v3208_v9 }
 0x1b3   : > { %v1701_v50 = vpop.f32.mrf.mxu0 }
 0x1b4   : > { %v1700_v55 = vadd.f32 %v1699_v6, %v1651_v40 }
 0x1b6   : > { %v1721_v18 = vmax.f32 %v1700_v55, 0.0 }
 0x1b7   : > { %v1603_v24 = vpop.f32.mrf.mxu2 }
 0x1b8   : > { %v1604_v53 = vadd.f32 %v1603_v24, %v1555_v17 }
 0x1b9   : > { %v1652_v58 = vpop.f32.mrf.mxu3  ;;  %v1557_v25 = vpop.f32.mrf.mxu1 }
 0x1ba   : > { %v1653_v47 = vadd.f32 %v1652_v58, %v1604_v53  ;;  %v1558_v0 = vadd.f32 %v1557_v25, %v3211_v42 }
 0x1bb   : > { %v1704_v36 = vpop.f32.mrf.mxu0 }
 0x1bc   : > { %v1702_v14 = vadd.f32 %v1701_v50, %v1653_v47 }
 0x1be   : > { %v1722_v32 = vmax.f32 %v1702_v14, 0.0 }
 0x1bf   : > { %v1606_v11 = vpop.f32.mrf.mxu2 }
 0x1c0   : > { %v2395_v19 = vpack.c.bf16 %v1722_v32, %v1721_v18  ;;  %v1607_v9 = vadd.f32 %v1606_v11, %v1558_v0 }
 0x1c1   : > { %v1655_v13 = vpop.f32.mrf.mxu3  ;;  %v1559_v52 = vpop.f32.mrf.mxu1 }
 0x1c2   : > { %2407 = vst [vmem:[%s3221_s8 + $0x30] sm:$0xff] %v2395_v19   ;;  %v1656_v46 = vadd.f32 %v1655_v13, %v1607_v9  ;;  %v1560_v22 = vadd.f32 %v1559_v52, %v3213_v4 }
 0x1c3   : > { %v1706_v34 = vpop.f32.mrf.mxu0 }
 0x1c4   : > { %v1705_v1 = vadd.f32 %v1704_v36, %v1656_v46 }
 0x1c6   : > { %v1723_v49 = vmax.f32 %v1705_v1, 0.0 }
 0x1c7   : > { %v1608_v62 = vpop.f32.mrf.mxu2 }
 0x1c8   : > { %v1609_v61 = vadd.f32 %v1608_v62, %v1560_v22 }
 0x1c9   : > { %v1657_v31 = vpop.f32.mrf.mxu3 }
 0x1ca   : > { %v1658_v33 = vadd.f32 %v1657_v31, %v1609_v61 }
 0x1cc   : > { %v1707_v8 = vadd.f32 %v1706_v34, %v1658_v33 }
 0x1ce   : > { %v1724_v16 = vmax.f32 %v1707_v8, 0.0 }
 0x1d0   : > { %v2400_v39 = vpack.c.bf16 %v1724_v16, %v1723_v49 }
 0x1d2   : > { %2408 = vst [vmem:[%s3221_s8 + $0x38] sm:$0xff] %v2400_v39  }
 0x1d3 PF: > { %s14_s17 = sadd.s32 1, %s2483_s17   ;;  %s3331_s15 = smov %s2479_s16 }
 0x1d4   : > { %p11_p5 = scmp.ge.s32.totalorder %s14_s17, 4   ;;  %s3332_s16 = smov %s3334_s18 }
 0x1d6   :  { %13 = sbr.rel (!%p11_p5) target bundleno = 2 (0x2), region = 69 }

// kernel: conv2d_subsampling8.4
= control target key start
LH: loop header
LB: loop body
LE: loop exit
PB: predicated region body
PF: predicated region fallthrough
CT: control target
= control target key end

     0   :  { %s2030_s15 = smov 0   ;;  %s2032_s16 = smov 0   ;;  %s2512_s0 = inlined_call_operand.vmem [shape: bf16[2,17,8,384], index: 0, kind: input, shape index: {}, may-alias: {0,1}]   ;;  %s2513_s1 = inlined_call_operand.vmem [shape: bf16[2,17,8,384], index: 1, kind: input, shape index: {}, may-alias: {0,1}]   ;;  %s2514_s2 = inlined_call_operand.vmem [shape: bf16[1152,128], index: 2, kind: input, shape index: {}]   ;;  %s2515_s3 = inlined_call_operand.vmem [shape: f32[1,128], index: 3, kind: input, shape index: {}]   ;;  %s2516_s4 = inlined_call_operand.vmem [shape: bf16[2,8,8,128], index: 4, kind: output, shape index: {}]  }
   0x1   :  { %s2034_s17 = smov 0  }
   0x2 LB: > { %s26_s18 = sadd.s32 1, %s1999_s16  ;;  %p1484_p0 = scmp.ge.s32.totalorder %s2003_s17, 1  ;;  %s2003_s17 = sphi %s2034_s17, %s14_s17   ;;  %s1999_s16 = sphi %s2032_s16, %s2518_s16   ;;  %s1995_s15 = sphi %s2030_s15, %s2517_s15  }
   0x3   : > { %p28_p1 = scmp.ge.s32.totalorder %s26_s18, 2  ;;  %p218_p2 = scmp.lt.s32.totalorder %s2003_s17, 3 }
   0x5   : > { %s2520_s18 = smov (%p28_p1, %s26_s18), 0  ;;  %p219_p3 = pnand %p1484_p0, %p218_p2 }
   0x6   : > { %p275_p4 = scmp.lt.s32.totalorder (!%p219_p3), %s1995_s15, 1 }
   0x7   : > { %222 = sbr.rel (%p219_p3) target bundleno = 335 (0x14f), region = 36 }
   0xc   : > { %v1849_v0 = vld [vmem:[%s2514_s2 + $0x38] sm:$0xff]  ;;  %v1848_v2 = vld [vmem:[%s2514_s2 + $0x30] sm:$0xff]  ;;  %s2522_s15 = smov (!%p275_p4, %s1995_s15), 1  ;;  %v1847_v6 = vld [vmem:[%s2514_s2 + $0x28] sm:$0xff] }
   0xd   : > { %v1865_v1 = vld [vmem:[%s2514_s2 + $0xb8] sm:$0xff]  ;;  %1937 = vmatpush.bf16.msra.mxu1 %v1849_v0  ;;  %1084 = vmatpush.bf16.msra.mxu0 %v1849_v0  ;;  %v1864_v3 = vld [vmem:[%s2514_s2 + $0xb0] sm:$0xff]  ;;  %v1863_v7 = vld [vmem:[%s2514_s2 + $0xa8] sm:$0xff]  ;;  %s1953_s19 = smul.u32 204, %s2522_s15 }
   0xe   : > { %1142 = vmatpush.bf16.msra.mxu2 %v1865_v1  ;;  %v1873_v4 = vld [vmem:[%s2514_s2 + $0xf8] sm:$0xff]  ;;  %v1872_v5 = vld [vmem:[%s2514_s2 + $0xf0] sm:$0xff]  ;;  %v1871_v8 = vld [vmem:[%s2514_s2 + $0xe8] sm:$0xff] }
   0xf   : > { %1171 = vmatpush.bf16.msra.mxu3 %v1873_v4  ;;  %v1846_v9 = vld [vmem:[%s2514_s2 + $0x20] sm:$0xff]  ;;  %v1845_v12 = vld [vmem:[%s2514_s2 + $0x18] sm:$0xff]  ;;  %s2098_s28 = scalar_lea.vmem %s2512_s0, %s1953_s19  ;;  %v1844_v15 = vld [vmem:[%s2514_s2 + $0x10] sm:$0xff]  ;;  %s1828_s26 = sadd.s32 192, %s1953_s19 }
  0x10   : > { %v1862_v10 = vld [vmem:[%s2514_s2 + $0xa0] sm:$0xff]  ;;  %v1861_v13 = vld [vmem:[%s2514_s2 + $0x98] sm:$0xff]  ;;  %v1860_v17 = vld [vmem:[%s2514_s2 + $0x90] sm:$0xff]  ;;  %s2271_s9 = scalar_lea.vmem %s2513_s1, %s1828_s26 }
  0x11   : > { %1938 = vmatpush.bf16.msra.mxu1 %v1848_v2  ;;  %1085 = vmatpush.bf16.msra.mxu0 %v1848_v2  ;;  %v1870_v11 = vld [vmem:[%s2514_s2 + $0xe0] sm:$0xff]  ;;  %v1869_v14 = vld [vmem:[%s2514_s2 + $0xd8] sm:$0xff]  ;;  %v1843_v19 = vld [vmem:[%s2514_s2 + $0x8] sm:$0xff] }
  0x12   : > { %1143 = vmatpush.bf16.msra.mxu2 %v1864_v3  ;;  %v318_v16 = vld [vmem:[%s2098_s28 + $0x20] sm:$0xf]  ;;  %v2111_v18 = vld [vmem:[%s2098_s28 + $0x38] sm:$0xf]  ;;  %v1868_v22 = vld [vmem:[%s2514_s2 + $0xd0] sm:$0xff] }
  0x13   : > { %1172 = vmatpush.bf16.msra.mxu3 %v1872_v5  ;;  %v2117_v20 = vld [vmem:[%s2098_s28 + $0x60] sm:$0xff]  ;;  %v368_v21 = vunpack.c.l.b16 %v318_v16  ;;  %v371_v23 = vunpack.c.l.b16 %v2111_v18  ;;  %v2124_v24 = vld [vmem:[%s2098_s28 + $0x78] sm:$0xff]  ;;  %v1859_v27 = vld [vmem:[%s2514_s2 + $0x88] sm:$0xff] }
  0x14   : > { %v2127_v25 = vld [vmem:[%s2098_s28] sm:$0xff]  ;;  %v2130_v26 = vld [vmem:[%s2098_s28 + $0x18] sm:$0xff]  ;;  %v314_v28 = vld [vmem:[%s2098_s28 + $0x8] sm:$0xf]  ;;  %v375_v30 = vunpack.c.l.b16 %v2117_v20  ;;  %v378_v31 = vunpack.c.l.b16 %v2124_v24  ;;  %v379_v18 = vunpack.c.h.b16 %v2124_v24 }
  0x15   : > { %1939 = vmatpush.bf16.msra.mxu1 %v1847_v6  ;;  %1086 = vmatpush.bf16.msra.mxu0 %v1847_v6  ;;  %v2138_v29 = vpack.c.b16 %v371_v23, %v368_v21  ;;  %v363_v32 = vunpack.c.l.b16 %v2127_v25  ;;  %v366_v33 = vunpack.c.l.b16 %v2130_v26  ;;  %v1867_v34 = vld [vmem:[%s2514_s2 + $0xc8] sm:$0xff]  ;;  %v1842_v35 = vld [vmem:[%s2514_s2] sm:$0xff]  ;;  %v365_v36 = vunpack.c.l.b16 %v314_v28  ;;  %v1857_v37 = vld [vmem:[%s2514_s2 + $0x78] sm:$0xff] }
  0x16   : > { %1144 = vmatpush.bf16.msra.mxu2 %v1863_v7  ;;  %v1858_v38 = vld [vmem:[%s2514_s2 + $0x80] sm:$0xff]  ;;  %v1881_v39 = vld [vmem:[%s2514_s2 + $0x138] sm:$0xff]  ;;  %v598_v41 = vpack.c.b16 %v378_v31, %v375_v30  ;;  %v1491_v45 = vld [vmem:[%s2098_s28 + $0xc] sm:$0xf] }
  0x17   : > { %1173 = vmatpush.bf16.msra.mxu3 %v1871_v8  ;;  %v1897_v40 = vld [vmem:[%s2514_s2 + $0x1b8] sm:$0xff]  ;;  %v580_v42 = vpack.c.b16 %v366_v33, %v363_v32  ;;  %v582_v43 = vpack.c.b16 %v368_v21, %v365_v36  ;;  %v1866_v44 = vld [vmem:[%s2514_s2 + $0xc0] sm:$0xff]  ;;  %v1856_v47 = vld [vmem:[%s2514_s2 + $0x70] sm:$0xff] }
  0x18   : > { %v1831_v46 = vld [vmem:[%s2098_s28 + $0x20] sm:$0xf0]  ;;  %v1905_v48 = vld [vmem:[%s2514_s2 + $0x1f8] sm:$0xff]  ;;  %v1880_v49 = vld [vmem:[%s2514_s2 + $0x130] sm:$0xff] }
  0x19   : > { %1940 = vmatpush.bf16.msra.mxu1 %v1846_v9  ;;  %1087 = vmatpush.bf16.msra.mxu0 %v1846_v9  ;;  %v1896_v50 = vld [vmem:[%s2514_s2 + $0x1b0] sm:$0xff]  ;;  %v1492_v51 = vor.u32 %v1831_v46, %v1491_v45  ;;  %v1855_v52 = vld [vmem:[%s2514_s2 + $0x68] sm:$0xff]  ;;  %v1854_v60 = vld [vmem:[%s2514_s2 + $0x60] sm:$0xff] }
  0x1a   : > { %1145 = vmatpush.bf16.msra.mxu2 %v1862_v10  ;;  %v1904_v53 = vld [vmem:[%s2514_s2 + $0x1f0] sm:$0xff]  ;;  %v1879_v54 = vld [vmem:[%s2514_s2 + $0x128] sm:$0xff]  ;;  %v1878_v63 = vld [vmem:[%s2514_s2 + $0x120] sm:$0xff] }
  0x1b   : > { %1174 = vmatpush.bf16.msra.mxu3 %v1870_v11  ;;  %v1895_v55 = vld [vmem:[%s2514_s2 + $0x1a8] sm:$0xff]  ;;  %v2198_v56 = vld [vmem:[%s2098_s28 + $0x90] sm:$0xff]  ;;  %v1894_v0 = vld [vmem:[%s2514_s2 + $0x1a0] sm:$0xff] }
  0x1c   : > { %v2201_v57 = vld [vmem:[%s2098_s28 + $0xa8] sm:$0xff]  ;;  %v2204_v58 = vld [vmem:[%s2098_s28 + $0x30] sm:$0xff]  ;;  %v381_v1 = vunpack.c.l.b16 %v2198_v56  ;;  %v1853_v6 = vld [vmem:[%s2514_s2 + $0x58] sm:$0xff] }
  0x1d   : > { %1941 = vmatpush.bf16.msra.mxu1 %v1845_v12  ;;  %1088 = vmatpush.bf16.msra.mxu0 %v1845_v12  ;;  %v2207_v59 = vld [vmem:[%s2098_s28 + $0x48] sm:$0xff]  ;;  %v2213_v61 = vld [vmem:[%s2098_s28 + $0x50] sm:$0xf]  ;;  %v384_v2 = vunpack.c.l.b16 %v2201_v57  ;;  %v369_v3 = vunpack.c.l.b16 %v2204_v58  ;;  %v1877_v7 = vld [vmem:[%s2514_s2 + $0x118] sm:$0xff] }
  0x1e   : > { %1146 = vmatpush.bf16.msra.mxu2 %v1861_v13  ;;  %v1903_v62 = vld [vmem:[%s2514_s2 + $0x1e8] sm:$0xff]  ;;  %v372_v4 = vunpack.c.l.b16 %v2207_v59  ;;  %v374_v5 = vunpack.c.l.b16 %v2213_v61  ;;  %v1503_v11 = vld [vmem:[%s2098_s28 + $0x3c] sm:$0xf]  ;;  %v1834_v12 = vld [vmem:[%s2098_s28 + $0x50] sm:$0xf0] }
  0x1f   : > { %1175 = vmatpush.bf16.msra.mxu3 %v1869_v14  ;;  %v607_v8 = vpack.c.b16 %v384_v2, %v381_v1  ;;  %v1852_v13 = vld [vmem:[%s2514_s2 + $0x50] sm:$0xff]  ;;  %v1893_v16 = vld [vmem:[%s2514_s2 + $0x198] sm:$0xff]  ;;  %v1902_v21 = vld [vmem:[%s2514_s2 + $0x1e0] sm:$0xff] }
  0x20   : > { %v589_v9 = vpack.c.b16 %v372_v4, %v369_v3  ;;  %v591_v10 = vpack.c.b16 %v374_v5, %v371_v23  ;;  %v1876_v14 = vld [vmem:[%s2514_s2 + $0x110] sm:$0xff]  ;;  %v1901_v36 = vld [vmem:[%s2514_s2 + $0x1d8] sm:$0xff] }
  0x21   : > { %1942 = vmatpush.bf16.msra.mxu1 %v1844_v15  ;;  %1089 = vmatpush.bf16.msra.mxu0 %v1844_v15  ;;  %v1504_v15 = vor.u32 %v1834_v12, %v1503_v11  ;;  %v2277_v23 = vld [vmem:[%s2098_s28 + $0xb0] sm:$0xf]  ;;  %v1913_v45 = vld [vmem:[%s2514_s2 + $0x238] sm:$0xff]  ;;  %v1899_v12 = vld [vmem:[%s2514_s2 + $0x1c8] sm:$0xff] }
  0x22   : > { %1147 = vmatpush.bf16.msra.mxu2 %v1860_v17  ;;  %v376_v17 = vunpack.c.h.b16 %v2117_v20  ;;  %v386_v32 = vunpack.c.l.b16 %v2277_v23  ;;  %v1830_v46 = vld [vmem:[%s2098_s28 + $0x10] sm:$0xf]  ;;  %v1909_v23 = vld [vmem:[%s2514_s2 + $0x218] sm:$0xff]  ;;  %v345_v20 = vld [vmem:[%s2271_s9] sm:$0xff] }
  0x23   : > { %1176 = vmatpush.bf16.msra.mxu3 %v1868_v22  ;;  %v1875_v22 = vld [vmem:[%s2514_s2 + $0x108] sm:$0xff] }
  0x24   : > { %v2284_v28 = vpack.c.b16 %v379_v18, %v376_v17 }
  0x25   : > { %1943 = vmatpush.bf16.msra.mxu1 %v1843_v19  ;;  %1090 = vmatpush.bf16.msra.mxu0 %v1843_v19  ;;  %v1851_v19 = vld [vmem:[%s2514_s2 + $0x48] sm:$0xff] }
  0x26   : > { %1148 = vmatpush.bf16.msra.mxu2 %v1859_v27  ;;  %v346_v27 = vld [vmem:[%s2271_s9 + $0x8] sm:$0xf] }
  0x27   : > { %1177 = vmatpush.bf16.msra.mxu3 %v1867_v34  ;;  %v431_v34 = vunpack.c.l.b16 %v346_v27 }
  0x29   : > { %1944 = vmatpush.bf16.msra.mxu1 %v1842_v35  ;;  %1091 = vmatpush.bf16.msra.mxu0 %v1842_v35  ;;  %v1892_v35 = vld [vmem:[%s2514_s2 + $0x190] sm:$0xff] }
  0x2a   : > { %1149 = vmatpush.bf16.msra.mxu2 %v1858_v38  ;;  %v2297_v38 = vld [vmem:[%s2098_s28 + $0x68] sm:$0xf] }
  0x2b   : > { %1178 = vmatpush.bf16.msra.mxu3 %v1866_v44  ;;  %v367_v44 = vunpack.c.h.b16 %v2130_v26  ;;  %v595_v26 = vpack.c.b16 %v375_v30, %v372_v4  ;;  %v604_v30 = vpack.c.b16 %v381_v1, %v378_v31  ;;  %v430_v4 = vunpack.c.h.b16 %v345_v20  ;;  %v1523_v31 = vld [vmem:[%s2098_s28 + $0x74] sm:$0xf] }
  0x2c   : > { %1102 = vmatmul.bf16.vlgmr.msra.gmra.mxu1 %v598_v41  ;;  %1092 = vmatmul.bf16.vlgmr.msra.gmra.mxu0 %v580_v42  ;;  %v1889_v41 = vld [vmem:[%s2514_s2 + $0x178] sm:$0xff]  ;;  %v1874_v42 = vld [vmem:[%s2514_s2 + $0x100] sm:$0xff] }
  0x2d   : > { %1113 = vmatpush.bf16.msrb.mxu1 %v1857_v37  ;;  %1200 = vmatpush.bf16.msrb.mxu0 %v1881_v39  ;;  %v1850_v37 = vld [vmem:[%s2514_s2 + $0x40] sm:$0xff] }
  0x2e   : > { %1258 = vmatpush.bf16.msrb.mxu2 %v1897_v40  ;;  %1179 = vmatmul.bf16.vlgmr.msra.gmra.mxu3 %v1492_v51  ;;  %v2300_v39 = vld [vmem:[%s2098_s28 + $0x80] sm:$0xf]  ;;  %v2304_v40 = vpack.c.b16 %v431_v34, %v386_v32  ;;  %v1884_v34 = vld [vmem:[%s2514_s2 + $0x150] sm:$0xff] }
  0x2f   : > { %1150 = vmatmul.bf16.vlgmr.msra.gmra.mxu2 %v582_v43  ;;  %1287 = vmatpush.bf16.msrb.mxu3 %v1905_v48  ;;  %v364_v43 = vunpack.c.h.b16 %v2127_v25  ;;  %v377_v48 = vunpack.c.l.b16 %v2297_v38  ;;  %v1888_v25 = vld [vmem:[%s2514_s2 + $0x170] sm:$0xff] }
  0x31   : > { %1114 = vmatpush.bf16.msrb.mxu1 %v1856_v47  ;;  %1201 = vmatpush.bf16.msrb.mxu0 %v1880_v49  ;;  %v1493_v47 = vld [vmem:[%s2098_s28 + $0x24] sm:$0xf0]  ;;  %v380_v49 = vunpack.c.l.b16 %v2300_v39  ;;  %v597_v24 = vpack.c.b16 %v377_v48, %v374_v5 }
  0x32   : > { %1259 = vmatpush.bf16.msrb.mxu2 %v1896_v50  ;;  %v581_v50 = vpack.c.b16 %v367_v44, %v364_v43  ;;  %v1496_v51 = vor.u32 %v1830_v46, %v1493_v47  ;;  %v1898_v46 = vld [vmem:[%s2514_s2 + $0x1c0] sm:$0xff]  ;;  %v1908_v47 = vld [vmem:[%s2514_s2 + $0x210] sm:$0xff] }
  0x33   : > { %1288 = vmatpush.bf16.msrb.mxu3 %v1904_v53  ;;  %v1515_v53 = vld [vmem:[%s2098_s28 + $0x6c] sm:$0xf] }
  0x35   : > { %1115 = vmatpush.bf16.msrb.mxu1 %v1855_v52  ;;  %1202 = vmatpush.bf16.msrb.mxu0 %v1879_v54  ;;  %v600_v52 = vpack.c.b16 %v380_v49, %v377_v48  ;;  %v1837_v54 = vld [vmem:[%s2098_s28 + $0x80] sm:$0xf0] }
  0x36   : > { %1260 = vmatpush.bf16.msrb.mxu2 %v1895_v55  ;;  %v1912_v55 = vld [vmem:[%s2514_s2 + $0x230] sm:$0xff] }
  0x37   : > { %1289 = vmatpush.bf16.msrb.mxu3 %v1903_v62  ;;  %v1891_v62 = vld [vmem:[%s2514_s2 + $0x188] sm:$0xff] }
  0x39   : > { %1116 = vmatpush.bf16.msrb.mxu1 %v1854_v60  ;;  %1203 = vmatpush.bf16.msrb.mxu0 %v1878_v63  ;;  %v1887_v60 = vld [vmem:[%s2514_s2 + $0x168] sm:$0xff]  ;;  %v1516_v63 = vor.u32 %v1837_v54, %v1515_v53  ;;  %v586_v53 = vpack.c.b16 %v369_v3, %v366_v33 }
  0x3a   : > { %1261 = vmatpush.bf16.msrb.mxu2 %v1894_v0  ;;  %v382_v0 = vunpack.c.h.b16 %v2198_v56  ;;  %v1838_v56 = vld [vmem:[%s2098_s28 + $0x88] sm:$0xf0] }
  0x3b   : > { %1290 = vmatpush.bf16.msrb.mxu3 %v1902_v21  ;;  %v1833_v21 = vld [vmem:[%s2098_s28 + $0x40] sm:$0xf]  ;;  %v1524_v1 = vor.u32 %v1838_v56, %v1523_v31 }
  0x3c   : > { %1107 = vmatmul.bf16.gmra.mxu1 %v607_v8  ;;  %1097 = vmatmul.bf16.gmra.mxu0 %v589_v9  ;;  %v1900_v8 = vld [vmem:[%s2514_s2 + $0x1d0] sm:$0xff]  ;;  %v1911_v9 = vld [vmem:[%s2514_s2 + $0x228] sm:$0xff] }
  0x3d   : > { %1117 = vmatpush.bf16.msrb.mxu1 %v1853_v6  ;;  %1204 = vmatpush.bf16.msrb.mxu0 %v1877_v7  ;;  %v385_v6 = vunpack.c.h.b16 %v2201_v57  ;;  %v1890_v7 = vld [vmem:[%s2514_s2 + $0x180] sm:$0xff] }
  0x3e   : > { %1262 = vmatpush.bf16.msrb.mxu2 %v1893_v16  ;;  %1184 = vmatmul.bf16.gmra.mxu3 %v1504_v15  ;;  %v1885_v15 = vld [vmem:[%s2514_s2 + $0x158] sm:$0xff]  ;;  %v370_v16 = vunpack.c.h.b16 %v2204_v58 }
  0x3f   : > { %1155 = vmatmul.bf16.gmra.mxu2 %v591_v10  ;;  %1291 = vmatpush.bf16.msrb.mxu3 %v1901_v36  ;;  %v1886_v10 = vld [vmem:[%s2514_s2 + $0x160] sm:$0xff]  ;;  %v2359_v11 = vpack.c.b16 %v385_v6, %v382_v0  ;;  %v1529_v58 = vld [vmem:[%s2098_s28 + $0xb4] sm:$0xf0] }
  0x40   : > { %v587_v54 = vpack.c.b16 %v370_v16, %v367_v44  ;;  %v1499_v44 = vld [vmem:[%s2098_s28 + $0x14] sm:$0xf] }
  0x41   : > { %1118 = vmatpush.bf16.msrb.mxu1 %v1852_v13  ;;  %1205 = vmatpush.bf16.msrb.mxu0 %v1876_v14  ;;  %v1910_v13 = vld [vmem:[%s2514_s2 + $0x220] sm:$0xff]  ;;  %v2368_v14 = vld [vmem:[%s2098_s28 + $0x98] sm:$0xf] }
  0x42   : > { %1263 = vmatpush.bf16.msrb.mxu2 %v1892_v35  ;;  %v383_v27 = vunpack.c.l.b16 %v2368_v14 }
  0x43   : > { %1292 = vmatpush.bf16.msrb.mxu3 %v1900_v8  ;;  %v1535_v8 = vld [vmem:[%s2098_s28 + $0xa4] sm:$0xf] }
  0x44   : > { %v606_v61 = vpack.c.b16 %v383_v27, %v380_v49 }
  0x45   : > { %1119 = vmatpush.bf16.msrb.mxu1 %v1851_v19  ;;  %1206 = vmatpush.bf16.msrb.mxu0 %v1875_v22  ;;  %v373_v19 = vunpack.c.h.b16 %v2207_v59  ;;  %v1505_v22 = vld [vmem:[%s2098_s28 + $0x54] sm:$0xf0]  ;;  %v1832_v59 = vld [vmem:[%s2098_s28 + $0x28] sm:$0xf0] }
  0x46   : > { %1264 = vmatpush.bf16.msrb.mxu2 %v1891_v62  ;;  %v1508_v36 = vor.u32 %v1833_v21, %v1505_v22  ;;  %v1500_v62 = vor.u32 %v1832_v59, %v1499_v44 }
  0x47   : > { %1293 = vmatpush.bf16.msrb.mxu3 %v1899_v12  ;;  %v590_v35 = vpack.c.b16 %v373_v19, %v370_v16  ;;  %v596_v3 = vpack.c.b16 %v376_v17, %v373_v19  ;;  %v614_v17 = vpack.c.b16 %v430_v4, %v385_v6 }
  0x49   : > { %1120 = vmatpush.bf16.msrb.mxu1 %v1850_v37  ;;  %1207 = vmatpush.bf16.msrb.mxu0 %v1874_v42  ;;  %v609_v37 = vpack.c.b16 %v386_v32, %v383_v27  ;;  %v1840_v42 = vld [vmem:[%s2098_s28 + $0xb0] sm:$0xf0]  ;;  %v1882_v32 = vld [vmem:[%s2514_s2 + $0x140] sm:$0xff] }
  0x4a   : > { %1265 = vmatpush.bf16.msrb.mxu2 %v1890_v7 }
  0x4b   : > { %1294 = vmatpush.bf16.msrb.mxu3 %v1898_v46 }
  0x4c   : > { %1121 = vmatmul.bf16.vlgmr.msrb.gmra.mxu1 %v581_v50  ;;  %1208 = vmatmul.bf16.vlgmr.msrb.gmra.mxu0 %v1496_v51  ;;  %v1836_v50 = vld [vmem:[%s2098_s28 + $0x70] sm:$0xf]  ;;  %v1517_v51 = vld [vmem:[%s2098_s28 + $0x84] sm:$0xf0] }
  0x4d   : > { %1229 = vmatpush.bf16.msra.mxu1 %v1889_v41  ;;  %1316 = vmatpush.bf16.msra.mxu0 %v1913_v45  ;;  %v1527_v41 = vld [vmem:[%s2098_s28 + $0x9c] sm:$0xf] }
  0x4e   : > { %1189 = vmatmul.bf16.gmra.mxu3 %v1516_v63  ;;  %1945 = vmatpush.bf16.msra.mxu2 %v1913_v45  ;;  %v1528_v43 = vor.u32 %v1840_v42, %v1527_v41  ;;  %v1883_v45 = vld [vmem:[%s2514_s2 + $0x148] sm:$0xff]  ;;  %v1835_v63 = vld [vmem:[%s2098_s28 + $0x58] sm:$0xf0] }
  0x4f   : > { %1160 = vmatmul.bf16.gmra.mxu2 %v600_v52  ;;  %v1520_v52 = vor.u32 %v1836_v50, %v1517_v51 }
  0x51   : > { %1230 = vmatpush.bf16.msra.mxu1 %v1888_v25  ;;  %1317 = vmatpush.bf16.msra.mxu0 %v1912_v55  ;;  %v1907_v25 = vld [vmem:[%s2514_s2 + $0x208] sm:$0xff] }
  0x52   : > { %1946 = vmatpush.bf16.msra.mxu2 %v1912_v55  ;;  %v1906_v55 = vld [vmem:[%s2514_s2 + $0x200] sm:$0xff] }
  0x55   : > { %1231 = vmatpush.bf16.msra.mxu1 %v1887_v60  ;;  %1318 = vmatpush.bf16.msra.mxu0 %v1911_v9  ;;  %v1839_v60 = vld [vmem:[%s2098_s28 + $0xa0] sm:$0xf] }
  0x56   : > { %1947 = vmatpush.bf16.msra.mxu2 %v1911_v9  ;;  %v1532_v33 = vor.u32 %v1839_v60, %v1529_v58  ;;  %v1841_v9 = vld [vmem:[%s2098_s28 + $0xb8] sm:$0xf0] }
  0x59   : > { %1232 = vmatpush.bf16.msra.mxu1 %v1886_v10  ;;  %1319 = vmatpush.bf16.msra.mxu0 %v1910_v13  ;;  %v1536_v10 = vor.u32 %v1841_v9, %v1535_v8 }
  0x5a   : > { %1948 = vmatpush.bf16.msra.mxu2 %v1910_v13 }
  0x5c   : > { %1126 = vmatmul.bf16.gmra.mxu1 %v590_v35  ;;  %1213 = vmatmul.bf16.gmra.mxu0 %v1508_v36 }
  0x5d   : > { %1233 = vmatpush.bf16.msra.mxu1 %v1885_v15  ;;  %1320 = vmatpush.bf16.msra.mxu0 %v1909_v23 }
  0x5e   : > { %1194 = vmatmul.bf16.gmra.mxu3 %v1528_v43  ;;  %1949 = vmatpush.bf16.msra.mxu2 %v1909_v23 }
  0x5f   : > { %1165 = vmatmul.bf16.gmra.mxu2 %v609_v37 }
  0x61   : > { %1234 = vmatpush.bf16.msra.mxu1 %v1884_v34  ;;  %1321 = vmatpush.bf16.msra.mxu0 %v1908_v47 }
  0x62   : > { %1950 = vmatpush.bf16.msra.mxu2 %v1908_v47 }
  0x65   : > { %1235 = vmatpush.bf16.msra.mxu1 %v1883_v45  ;;  %1322 = vmatpush.bf16.msra.mxu0 %v1907_v25 }
  0x66   : > { %1951 = vmatpush.bf16.msra.mxu2 %v1907_v25 }
  0x69   : > { %1236 = vmatpush.bf16.msra.mxu1 %v1882_v32  ;;  %1323 = vmatpush.bf16.msra.mxu0 %v1906_v55 }
  0x6a   : > { %1952 = vmatpush.bf16.msra.mxu2 %v1906_v55 }
  0x6c   : > { %1131 = vmatmul.bf16.gmra.mxu1 %v2284_v28  ;;  %1218 = vmatmul.bf16.gmra.mxu0 %v1520_v52  ;;  %v605_v28 = vpack.c.b16 %v382_v0, %v379_v18  ;;  %v1511_v18 = vld [vmem:[%s2098_s28 + $0x44] sm:$0xf]  ;;  %v429_v0 = vunpack.c.l.b16 %v345_v20  ;;  %s1829_s28 = sshll.u32 %s2522_s15, 5 }
  0x6d   : > { %v1512_v7 = vor.u32 %v1835_v63, %v1511_v18  ;;  %s2487_s5 = scalar_lea.vmem %s2516_s4, %s1829_s28 }
  0x6e   : > { %1295 = vmatmul.bf16.vlgmr.msrb.gmra.mxu3 %v587_v54 }
  0x6f   : > { %1266 = vmatmul.bf16.vlgmr.msrb.gmra.mxu2 %v586_v53 }
  0x7c   : > { %1136 = vmatmul.bf16.gmra.mxu1 %v2359_v11  ;;  %1223 = vmatmul.bf16.gmra.mxu0 %v1532_v33 }
  0x7e   : > { %1300 = vmatmul.bf16.gmra.mxu3 %v596_v3 }
  0x7f   : > { %1271 = vmatmul.bf16.gmra.mxu2 %v595_v26 }
  0x8c   : > { %1237 = vmatmul.bf16.vlgmr.msra.gmra.mxu1 %v1500_v62  ;;  %1324 = vmatmul.bf16.vlgmr.msra.gmra.mxu0 %v2138_v29  ;;  %v613_v29 = vpack.c.b16 %v429_v0, %v384_v2 }
  0x8e   : > { %1305 = vmatmul.bf16.gmra.mxu3 %v605_v28 }
  0x8f   : > { %1276 = vmatmul.bf16.gmra.mxu2 %v604_v30 }
  0x9c   : > { %1242 = vmatmul.bf16.gmra.mxu1 %v1512_v7  ;;  %1329 = vmatmul.bf16.gmra.mxu0 %v597_v24 }
  0x9e   : > { %1310 = vmatmul.bf16.gmra.mxu3 %v614_v17 }
  0x9f   : > { %1281 = vmatmul.bf16.gmra.mxu2 %v613_v29 }
  0xa9   : > { %v1103_v6 = vpop.f32.mrf.mxu1  ;;  %v1093_v38 = vpop.f32.mrf.mxu0 }
  0xac   : > { %1247 = vmatmul.bf16.gmra.mxu1 %v1524_v1  ;;  %1334 = vmatmul.bf16.gmra.mxu0 %v606_v61 }
  0xaf   : > { %1339 = vmatmul.bf16.vlgmr.msra.gmra.mxu2 %v2304_v40  ;;  %v1980_v40 = vld [vmem:[%s2515_s3] ss:$0 sm:$0xff] }
  0xb0   : > { %v1094_v19 = vadd.f32 %v1980_v40, %v1093_v38  ;;  %v1104_v62 = vadd.f32 %v1980_v40, %v1103_v6 }
  0xb1   : > { %v1105_v2 = vpop.f32.mrf.mxu1  ;;  %v1095_v5 = vpop.f32.mrf.mxu0 }
  0xb2   : > { %v1151_v57 = vpop.f32.mrf.mxu2  ;;  %v1180_v48 = vpop.f32.mrf.mxu3  ;;  %v1096_v41 = vadd.f32 %v1980_v40, %v1095_v5  ;;  %v1106_v7 = vadd.f32 %v1980_v40, %v1105_v2 }
  0xb9   : > { %v1108_v12 = vpop.f32.mrf.mxu1  ;;  %v1098_v13 = vpop.f32.mrf.mxu0 }
  0xba   : > { %v1153_v11 = vpop.f32.mrf.mxu2  ;;  %v2457_v39 = vpop.f32.mrf.mxu3  ;;  %v1099_v25 = vadd.f32 %v1980_v40, %v1098_v13  ;;  %v1109_v6 = vadd.f32 %v1980_v40, %v1108_v12 }
  0xbc   : > { %1252 = vmatmul.bf16.gmra.mxu1 %v1536_v10 }
  0xc1   : > { %v1110_v14 = vpop.f32.mrf.mxu1  ;;  %v1100_v15 = vpop.f32.mrf.mxu0 }
  0xc2   : > { %v1156_v49 = vpop.f32.mrf.mxu2  ;;  %v1185_v16 = vpop.f32.mrf.mxu3  ;;  %v1101_v60 = vadd.f32 %v1980_v40, %v1100_v15  ;;  %v1111_v2 = vadd.f32 %v1980_v40, %v1110_v14 }
  0xc9   : > { %v1122_v22 = vpop.f32.mrf.mxu1  ;;  %v1209_v27 = vpop.f32.mrf.mxu0 }
  0xca   : > { %v1158_v21 = vpop.f32.mrf.mxu2  ;;  %v1123_v34 = vadd.f32 %v1122_v22, %v1094_v19  ;;  %v2462_v36 = vpop.f32.mrf.mxu3 }
  0xcc   : > { %v1152_v35 = vadd.f32 %v1151_v57, %v1123_v34 }
  0xce   : > { %v1181_v37 = vadd.f32 %v1180_v48, %v1152_v35 }
  0xd0   : > { %v1210_v42 = vadd.f32 %v1209_v27, %v1181_v37 }
  0xd1   : > { %v1124_v45 = vpop.f32.mrf.mxu1  ;;  %v1211_v46 = vpop.f32.mrf.mxu0 }
  0xd2   : > { %v1161_v43 = vpop.f32.mrf.mxu2  ;;  %v1125_v23 = vadd.f32 %v1124_v45, %v1096_v41  ;;  %v1190_v47 = vpop.f32.mrf.mxu3 }
  0xd4   : > { %v1154_v32 = vadd.f32 %v1153_v11, %v1125_v23 }
  0xd6   : > { %v1183_v37 = vadd.f32 %v2457_v39, %v1154_v32 }
  0xd9   : > { %v1127_v51 = vpop.f32.mrf.mxu1  ;;  %v1214_v52 = vpop.f32.mrf.mxu0 }
  0xda   : > { %v1163_v50 = vpop.f32.mrf.mxu2  ;;  %v1128_v53 = vadd.f32 %v1127_v51, %v1099_v25  ;;  %v2464_v26 = vpop.f32.mrf.mxu3 }
  0xdc   : > { %v1157_v54 = vadd.f32 %v1156_v49, %v1128_v53 }
  0xde   : > { %v1186_v55 = vadd.f32 %v1185_v16, %v1157_v54 }
  0xe0   : > { %v1215_v58 = vadd.f32 %v1214_v52, %v1186_v55 }
  0xe1   : > { %v1129_v3 = vpop.f32.mrf.mxu1  ;;  %v2466_v28 = vpop.f32.mrf.mxu0 }
  0xe2   : > { %v1166_v33 = vpop.f32.mrf.mxu2  ;;  %v1130_v44 = vadd.f32 %v1129_v3, %v1101_v60  ;;  %v1195_v18 = vpop.f32.mrf.mxu3 }
  0xe4   : > { %v1159_v59 = vadd.f32 %v1158_v21, %v1130_v44 }
  0xe6   : > { %v1188_v39 = vadd.f32 %v2462_v36, %v1159_v59 }
  0xe9   : > { %v1132_v20 = vpop.f32.mrf.mxu1  ;;  %v1219_v4 = vpop.f32.mrf.mxu0 }
  0xea   : > { %v1168_v30 = vpop.f32.mrf.mxu2  ;;  %v1133_v17 = vadd.f32 %v1132_v20, %v1104_v62  ;;  %v2474_v38 = vpop.f32.mrf.mxu3  ;;  %v1217_v62 = vadd.f32 %v2466_v28, %v1188_v39 }
  0xec   : > { %v1162_v63 = vadd.f32 %v1161_v43, %v1133_v17  ;;  %v1212_v43 = vadd.f32 %v1211_v46, %v1183_v37 }
  0xee   : > { %v1191_v0 = vadd.f32 %v1190_v47, %v1162_v63 }
  0xf0   : > { %v2468_v24 = vadd.f32 %v1219_v4, %v1191_v0 }
  0xf1   : > { %v1134_v31 = vpop.f32.mrf.mxu1  ;;  %v2470_v56 = vpop.f32.mrf.mxu0 }
  0xf2   : > { %v1267_v29 = vpop.f32.mrf.mxu2  ;;  %v1135_v1 = vadd.f32 %v1134_v31, %v1106_v7  ;;  %v1296_v11 = vpop.f32.mrf.mxu3 }
  0xf4   : > { %v2472_v61 = vadd.f32 %v1163_v50, %v1135_v1 }
  0xf6   : > { %v1193_v28 = vadd.f32 %v2464_v26, %v2472_v61 }
  0xf9   : > { %v1137_v5 = vpop.f32.mrf.mxu1  ;;  %v1224_v48 = vpop.f32.mrf.mxu0 }
  0xfa   : > { %v1269_v57 = vpop.f32.mrf.mxu2  ;;  %v1138_v8 = vadd.f32 %v1137_v5, %v1109_v6  ;;  %v1298_v22 = vpop.f32.mrf.mxu3 }
  0xfc   : > { %v1167_v9 = vadd.f32 %v1166_v33, %v1138_v8 }
  0xfe   : > { %v1196_v10 = vadd.f32 %v1195_v18, %v1167_v9 }
 0x100   : > { %v2476_v13 = vadd.f32 %v1224_v48, %v1196_v10  ;;  %v1222_v48 = vadd.f32 %v2470_v56, %v1193_v28 }
 0x101   : > { %v1139_v15 = vpop.f32.mrf.mxu1  ;;  %v2478_v16 = vpop.f32.mrf.mxu0 }
 0x102   : > { %v1272_v49 = vpop.f32.mrf.mxu2  ;;  %v1140_v19 = vadd.f32 %v1139_v15, %v1111_v2  ;;  %v1301_v47 = vpop.f32.mrf.mxu3 }
 0x104   : > { %v2480_v21 = vadd.f32 %v1168_v30, %v1140_v19 }
 0x106   : > { %v1198_v56 = vadd.f32 %v2474_v38, %v2480_v21 }
 0x109   : > { %v1238_v27 = vpop.f32.mrf.mxu1  ;;  %v1325_v12 = vpop.f32.mrf.mxu0 }
 0x10a   : > { %v1239_v34 = vadd.f32 %v1238_v27, %v1210_v42  ;;  %v1274_v35 = vpop.f32.mrf.mxu2  ;;  %v1303_v32 = vpop.f32.mrf.mxu3 }
 0x10c   : > { %v1268_v41 = vadd.f32 %v1267_v29, %v1239_v34 }
 0x10e   : > { %v1297_v45 = vadd.f32 %v1296_v11, %v1268_v41 }
 0x110   : > { %v1326_v51 = vadd.f32 %v1325_v12, %v1297_v45 }
 0x111   : > { %v1240_v14 = vpop.f32.mrf.mxu1  ;;  %v1327_v40 = vpop.f32.mrf.mxu0 }
 0x112   : > { %v1241_v23 = vadd.f32 %v1240_v14, %v1212_v43  ;;  %v1277_v50 = vpop.f32.mrf.mxu2  ;;  %v1345_v60 = vmax.f32 %v1326_v51, 0.0  ;;  %v1306_v0 = vpop.f32.mrf.mxu3  ;;  %v1227_v43 = vadd.f32 %v2478_v16, %v1198_v56 }
 0x114   : > { %v1270_v25 = vadd.f32 %v1269_v57, %v1241_v23 }
 0x116   : > { %v1299_v52 = vadd.f32 %v1298_v22, %v1270_v25 }
 0x118   : > { %v1328_v53 = vadd.f32 %v1327_v40, %v1299_v52 }
 0x119   : > { %v1243_v54 = vpop.f32.mrf.mxu1  ;;  %v1330_v55 = vpop.f32.mrf.mxu0 }
 0x11a   : > { %v1346_v42 = vmax.f32 %v1328_v53, 0.0  ;;  %v1244_v33 = vadd.f32 %v1243_v54, %v1215_v58  ;;  %v1279_v44 = vpop.f32.mrf.mxu2  ;;  %v1308_v8 = vpop.f32.mrf.mxu3 }
 0x11c   : > { %v1917_v46 = vpack.c.bf16 %v1346_v42, %v1345_v60  ;;  %v1273_v3 = vadd.f32 %v1272_v49, %v1244_v33 }
 0x11e   : > { %1918 = vst [vmem:[%s2487_s5] sm:$0xff] %v1917_v46   ;;  %v1302_v4 = vadd.f32 %v1301_v47, %v1273_v3 }
 0x120   : > { %v1331_v18 = vadd.f32 %v1330_v55, %v1302_v4 }
 0x121   : > { %v1245_v30 = vpop.f32.mrf.mxu1  ;;  %v1332_v20 = vpop.f32.mrf.mxu0 }
 0x122   : > { %v1246_v58 = vadd.f32 %v1245_v30, %v1217_v62  ;;  %v1282_v29 = vpop.f32.mrf.mxu2  ;;  %v1347_v36 = vmax.f32 %v1331_v18, 0.0  ;;  %v1311_v61 = vpop.f32.mrf.mxu3 }
 0x124   : > { %v1275_v17 = vadd.f32 %v1274_v35, %v1246_v58 }
 0x126   : > { %v1304_v63 = vadd.f32 %v1303_v32, %v1275_v17 }
 0x128   : > { %v1333_v7 = vadd.f32 %v1332_v20, %v1304_v63 }
 0x129   : > { %v1248_v31 = vpop.f32.mrf.mxu1  ;;  %v1335_v6 = vpop.f32.mrf.mxu0 }
 0x12a   : > { %v1348_v59 = vmax.f32 %v1333_v7, 0.0  ;;  %v1249_v1 = vadd.f32 %v1248_v31, %v2468_v24  ;;  %v1284_v2 = vpop.f32.mrf.mxu2  ;;  %v1313_v47 = vpop.f32.mrf.mxu3 }
 0x12c   : > { %v1922_v57 = vpack.c.bf16 %v1348_v59, %v1347_v36  ;;  %v1278_v5 = vadd.f32 %v1277_v50, %v1249_v1 }
 0x12e   : > { %1934 = vst [vmem:[%s2487_s5 + $0x8] sm:$0xff] %v1922_v57   ;;  %v1307_v10 = vadd.f32 %v1306_v0, %v1278_v5 }
 0x130   : > { %v1336_v19 = vadd.f32 %v1335_v6, %v1307_v10 }
 0x131   : > { %v1250_v9 = vpop.f32.mrf.mxu1  ;;  %v1337_v15 = vpop.f32.mrf.mxu0 }
 0x132   : > { %v1251_v11 = vadd.f32 %v1250_v9, %v1222_v48  ;;  %v1349_v12 = vmax.f32 %v1336_v19, 0.0  ;;  %v1340_v37 = vpop.f32.mrf.mxu2 }
 0x134   : > { %v1280_v49 = vadd.f32 %v1279_v44, %v1251_v11 }
 0x136   : > { %v1309_v22 = vadd.f32 %v1308_v8, %v1280_v49 }
 0x138   : > { %v1338_v24 = vadd.f32 %v1337_v15, %v1309_v22 }
 0x139   : > { %v1253_v27 = vpop.f32.mrf.mxu1 }
 0x13a   : > { %v1350_v34 = vmax.f32 %v1338_v24, 0.0  ;;  %v1254_v26 = vadd.f32 %v1253_v27, %v2476_v13  ;;  %v1342_v51 = vpop.f32.mrf.mxu2 }
 0x13c   : > { %v1927_v35 = vpack.c.bf16 %v1350_v34, %v1349_v12  ;;  %v1283_v41 = vadd.f32 %v1282_v29, %v1254_v26 }
 0x13e   : > { %1935 = vst [vmem:[%s2487_s5 + $0x10] sm:$0xff] %v1927_v35   ;;  %v1312_v40 = vadd.f32 %v1311_v61, %v1283_v41 }
 0x140   : > { %v1341_v25 = vadd.f32 %v1340_v37, %v1312_v40 }
 0x141   : > { %v1255_v14 = vpop.f32.mrf.mxu1 }
 0x142   : > { %v1256_v45 = vadd.f32 %v1255_v14, %v1227_v43  ;;  %v1351_v52 = vmax.f32 %v1341_v25, 0.0 }
 0x144   : > { %v1285_v23 = vadd.f32 %v1284_v2, %v1256_v45 }
 0x146   : > { %v1314_v50 = vadd.f32 %v1313_v47, %v1285_v23 }
 0x148   : > { %v1343_v13 = vadd.f32 %v1342_v51, %v1314_v50 }
 0x14a   : > { %v1352_v53 = vmax.f32 %v1343_v13, 0.0 }
 0x14c   : > { %v1932_v54 = vpack.c.bf16 %v1352_v53, %v1351_v52 }
 0x14e   : > { %1936 = vst [vmem:[%s2487_s5 + $0x18] sm:$0xff] %v1932_v54  }
 0x14f PF: > { %s14_s17 = sadd.s32 1, %s2003_s17   ;;  %s2517_s15 = smov %s1999_s16 }
 0x150   : > { %p11_p5 = scmp.ge.s32.totalorder %s14_s17, 4   ;;  %s2518_s16 = smov %s2520_s18 }
 0x152   :  { %13 = sbr.rel (!%p11_p5) target bundleno = 2 (0x2), region = 69 }

// kernel: conv2d_subsampling8.5
= control target key start
LH: loop header
LB: loop body
LE: loop exit
PB: predicated region body
PF: predicated region fallthrough
CT: control target
= control target key end

     0   :  { %s1405_s15 = smov 0   ;;  %s1407_s16 = smov 0   ;;  %s1650_s0 = inlined_call_operand.vmem [shape: bf16[2,8,1024], index: 0, kind: input, shape index: {}]   ;;  %s1651_s1 = inlined_call_operand.vmem [shape: bf16[1024,128], index: 1, kind: input, shape index: {}]   ;;  %s1652_s2 = inlined_call_operand.vmem [shape: f32[1,128], index: 2, kind: input, shape index: {}]   ;;  %s1653_s3 = inlined_call_operand.vmem [shape: f32[8,128], index: 3, kind: input, shape index: {}]   ;;  %s1654_s4 = inlined_call_operand.vmem [shape: f32[2,8,128], index: 4, kind: output, shape index: {}]  }
   0x1   :  { %s1409_s17 = smov 0  }
   0x2 LB: > { %s26_s18 = sadd.s32 1, %s1374_s16  ;;  %p1004_p0 = scmp.ge.s32.totalorder %s1378_s17, 1  ;;  %s1378_s17 = sphi %s1409_s17, %s14_s17   ;;  %s1374_s16 = sphi %s1407_s16, %s1656_s16   ;;  %s1370_s15 = sphi %s1405_s15, %s1655_s15  }
   0x3   : > { %p28_p1 = scmp.ge.s32.totalorder %s26_s18, 2  ;;  %p191_p2 = scmp.lt.s32.totalorder %s1378_s17, 3 }
   0x5   : > { %s1658_s18 = smov (%p28_p1, %s26_s18), 0  ;;  %p192_p3 = pnand %p1004_p0, %p191_p2 }
   0x6   : > { %p227_p4 = scmp.lt.s32.totalorder (!%p192_p3), %s1370_s15, 1 }
   0x7   : > { %195 = sbr.rel (%p192_p3) target bundleno = 219 (0xdb), region = 36 }
   0xc   : > { %v1274_v0 = vld [vmem:[%s1651_s1 + $0x38] sm:$0xff]  ;;  %v1273_v4 = vld [vmem:[%s1651_s1 + $0x30] sm:$0xff]  ;;  %v1272_v8 = vld [vmem:[%s1651_s1 + $0x28] sm:$0xff]  ;;  %s1660_s15 = smov (!%p227_p4, %s1370_s15), 1 }
   0xd   : > { %v1282_v1 = vld [vmem:[%s1651_s1 + $0x78] sm:$0xff]  ;;  %795 = vmatpush.bf16.msra.mxu0 %v1274_v0  ;;  %v1281_v5 = vld [vmem:[%s1651_s1 + $0x70] sm:$0xff]  ;;  %v1280_v9 = vld [vmem:[%s1651_s1 + $0x68] sm:$0xff]  ;;  %s1266_s11 = sshll.u32 %s1660_s15, 5  ;;  %s1007_s23 = sshll.u32 %s1660_s15, 3 }
   0xe   : > { %v1290_v2 = vld [vmem:[%s1651_s1 + $0xb8] sm:$0xff]  ;;  %808 = vmatpush.bf16.msra.mxu1 %v1282_v1  ;;  %v1289_v6 = vld [vmem:[%s1651_s1 + $0xb0] sm:$0xff]  ;;  %v1288_v10 = vld [vmem:[%s1651_s1 + $0xa8] sm:$0xff]  ;;  %s1505_s26 = scalar_lea.vmem %s1650_s0, %s1266_s11  ;;  %s246_s29 = scalar_lea.vmem %s1654_s4, %s1007_s23 }
   0xf   : > { %v1298_v3 = vld [vmem:[%s1651_s1 + $0xf8] sm:$0xff]  ;;  %821 = vmatpush.bf16.msra.mxu2 %v1290_v2  ;;  %v1297_v7 = vld [vmem:[%s1651_s1 + $0xf0] sm:$0xff]  ;;  %v1296_v11 = vld [vmem:[%s1651_s1 + $0xe8] sm:$0xff] }
  0x10   : > { %834 = vmatpush.bf16.msra.mxu3 %v1298_v3  ;;  %v1271_v12 = vld [vmem:[%s1651_s1 + $0x20] sm:$0xff]  ;;  %v1270_v16 = vld [vmem:[%s1651_s1 + $0x18] sm:$0xff]  ;;  %v1269_v20 = vld [vmem:[%s1651_s1 + $0x10] sm:$0xff] }
  0x11   : > { %796 = vmatpush.bf16.msra.mxu0 %v1273_v4  ;;  %v1279_v13 = vld [vmem:[%s1651_s1 + $0x60] sm:$0xff]  ;;  %v1278_v17 = vld [vmem:[%s1651_s1 + $0x58] sm:$0xff]  ;;  %v1277_v21 = vld [vmem:[%s1651_s1 + $0x50] sm:$0xff] }
  0x12   : > { %809 = vmatpush.bf16.msra.mxu1 %v1281_v5  ;;  %v1287_v14 = vld [vmem:[%s1651_s1 + $0xa0] sm:$0xff]  ;;  %v1286_v18 = vld [vmem:[%s1651_s1 + $0x98] sm:$0xff]  ;;  %v1285_v22 = vld [vmem:[%s1651_s1 + $0x90] sm:$0xff] }
  0x13   : > { %822 = vmatpush.bf16.msra.mxu2 %v1289_v6  ;;  %v1295_v15 = vld [vmem:[%s1651_s1 + $0xe0] sm:$0xff]  ;;  %v1294_v19 = vld [vmem:[%s1651_s1 + $0xd8] sm:$0xff]  ;;  %v1293_v23 = vld [vmem:[%s1651_s1 + $0xd0] sm:$0xff] }
  0x14   : > { %835 = vmatpush.bf16.msra.mxu3 %v1297_v7  ;;  %v1268_v24 = vld [vmem:[%s1651_s1 + $0x8] sm:$0xff]  ;;  %v247_v29 = vld [vmem:[%s1505_s26] sm:$0xff]  ;;  %v1306_v38 = vld [vmem:[%s1651_s1 + $0x138] sm:$0xff] }
  0x15   : > { %797 = vmatpush.bf16.msra.mxu0 %v1272_v8  ;;  %v1276_v25 = vld [vmem:[%s1651_s1 + $0x48] sm:$0xff]  ;;  %v1267_v30 = vld [vmem:[%s1651_s1] sm:$0xff]  ;;  %v387_v36 = vunpack.c.l.b16 %v247_v29  ;;  %v388_v37 = vunpack.c.h.b16 %v247_v29  ;;  %v1314_v39 = vld [vmem:[%s1651_s1 + $0x178] sm:$0xff] }
  0x16   : > { %810 = vmatpush.bf16.msra.mxu1 %v1280_v9  ;;  %v1284_v26 = vld [vmem:[%s1651_s1 + $0x88] sm:$0xff]  ;;  %v1275_v31 = vld [vmem:[%s1651_s1 + $0x40] sm:$0xff]  ;;  %v1322_v40 = vld [vmem:[%s1651_s1 + $0x1b8] sm:$0xff] }
  0x17   : > { %823 = vmatpush.bf16.msra.mxu2 %v1288_v10  ;;  %v1292_v27 = vld [vmem:[%s1651_s1 + $0xc8] sm:$0xff]  ;;  %v1283_v34 = vld [vmem:[%s1651_s1 + $0x80] sm:$0xff]  ;;  %v1330_v41 = vld [vmem:[%s1651_s1 + $0x1f8] sm:$0xff]  ;;  %v395_v44 = vpack.c.b16 %v387_v36, %v387_v36  ;;  %v396_v45 = vpack.c.b16 %v388_v37, %v388_v37 }
  0x18   : > { %836 = vmatpush.bf16.msra.mxu3 %v1296_v11  ;;  %v248_v28 = vld [vmem:[%s1505_s26 + $0x8] sm:$0xff]  ;;  %v1291_v35 = vld [vmem:[%s1651_s1 + $0xc0] sm:$0xff]  ;;  %v1305_v46 = vld [vmem:[%s1651_s1 + $0x130] sm:$0xff] }
  0x19   : > { %798 = vmatpush.bf16.msra.mxu0 %v1271_v12  ;;  %v389_v32 = vunpack.c.l.b16 %v248_v28  ;;  %v390_v33 = vunpack.c.h.b16 %v248_v28  ;;  %v1313_v47 = vld [vmem:[%s1651_s1 + $0x170] sm:$0xff]  ;;  %v1304_v50 = vld [vmem:[%s1651_s1 + $0x128] sm:$0xff]  ;;  %v1303_v54 = vld [vmem:[%s1651_s1 + $0x120] sm:$0xff] }
  0x1a   : > { %811 = vmatpush.bf16.msra.mxu1 %v1279_v13  ;;  %v1321_v48 = vld [vmem:[%s1651_s1 + $0x1b0] sm:$0xff]  ;;  %v1312_v51 = vld [vmem:[%s1651_s1 + $0x168] sm:$0xff]  ;;  %v1311_v55 = vld [vmem:[%s1651_s1 + $0x160] sm:$0xff] }
  0x1b   : > { %824 = vmatpush.bf16.msra.mxu2 %v1287_v14  ;;  %v397_v42 = vpack.c.b16 %v389_v32, %v389_v32  ;;  %v398_v43 = vpack.c.b16 %v390_v33, %v390_v33  ;;  %v1329_v49 = vld [vmem:[%s1651_s1 + $0x1f0] sm:$0xff]  ;;  %v1320_v52 = vld [vmem:[%s1651_s1 + $0x1a8] sm:$0xff]  ;;  %v1319_v56 = vld [vmem:[%s1651_s1 + $0x1a0] sm:$0xff] }
  0x1c   : > { %837 = vmatpush.bf16.msra.mxu3 %v1295_v15  ;;  %v1328_v53 = vld [vmem:[%s1651_s1 + $0x1e8] sm:$0xff]  ;;  %v1327_v57 = vld [vmem:[%s1651_s1 + $0x1e0] sm:$0xff]  ;;  %v1302_v58 = vld [vmem:[%s1651_s1 + $0x118] sm:$0xff] }
  0x1d   : > { %799 = vmatpush.bf16.msra.mxu0 %v1270_v16  ;;  %v1310_v59 = vld [vmem:[%s1651_s1 + $0x158] sm:$0xff]  ;;  %v1301_v62 = vld [vmem:[%s1651_s1 + $0x110] sm:$0xff]  ;;  %v1300_v2 = vld [vmem:[%s1651_s1 + $0x108] sm:$0xff] }
  0x1e   : > { %812 = vmatpush.bf16.msra.mxu1 %v1278_v17  ;;  %v1318_v60 = vld [vmem:[%s1651_s1 + $0x198] sm:$0xff]  ;;  %v1309_v63 = vld [vmem:[%s1651_s1 + $0x150] sm:$0xff]  ;;  %v1308_v3 = vld [vmem:[%s1651_s1 + $0x148] sm:$0xff] }
  0x1f   : > { %825 = vmatpush.bf16.msra.mxu2 %v1286_v18  ;;  %v1326_v61 = vld [vmem:[%s1651_s1 + $0x1d8] sm:$0xff]  ;;  %v1317_v0 = vld [vmem:[%s1651_s1 + $0x190] sm:$0xff]  ;;  %v1316_v5 = vld [vmem:[%s1651_s1 + $0x188] sm:$0xff] }
  0x20   : > { %838 = vmatpush.bf16.msra.mxu3 %v1294_v19  ;;  %v1325_v1 = vld [vmem:[%s1651_s1 + $0x1d0] sm:$0xff]  ;;  %v1324_v6 = vld [vmem:[%s1651_s1 + $0x1c8] sm:$0xff]  ;;  %v250_v7 = vld [vmem:[%s1505_s26 + $0x18] sm:$0xff] }
  0x21   : > { %800 = vmatpush.bf16.msra.mxu0 %v1269_v20  ;;  %v249_v4 = vld [vmem:[%s1505_s26 + $0x10] sm:$0xff]  ;;  %v1299_v10 = vld [vmem:[%s1651_s1 + $0x100] sm:$0xff]  ;;  %v393_v12 = vunpack.c.l.b16 %v250_v7  ;;  %v394_v13 = vunpack.c.h.b16 %v250_v7 }
  0x22   : > { %813 = vmatpush.bf16.msra.mxu1 %v1277_v21  ;;  %v391_v8 = vunpack.c.l.b16 %v249_v4  ;;  %v392_v9 = vunpack.c.h.b16 %v249_v4  ;;  %v1307_v11 = vld [vmem:[%s1651_s1 + $0x140] sm:$0xff] }
  0x23   : > { %826 = vmatpush.bf16.msra.mxu2 %v1285_v22  ;;  %v1315_v14 = vld [vmem:[%s1651_s1 + $0x180] sm:$0xff]  ;;  %v401_v18 = vpack.c.b16 %v393_v12, %v393_v12  ;;  %v402_v19 = vpack.c.b16 %v394_v13, %v394_v13 }
  0x24   : > { %839 = vmatpush.bf16.msra.mxu3 %v1293_v23  ;;  %v1323_v15 = vld [vmem:[%s1651_s1 + $0x1c0] sm:$0xff]  ;;  %v399_v16 = vpack.c.b16 %v391_v8, %v391_v8  ;;  %v400_v17 = vpack.c.b16 %v392_v9, %v392_v9 }
  0x25   : > { %801 = vmatpush.bf16.msra.mxu0 %v1268_v24 }
  0x26   : > { %814 = vmatpush.bf16.msra.mxu1 %v1276_v25 }
  0x27   : > { %827 = vmatpush.bf16.msra.mxu2 %v1284_v26  ;;  %v1355_v26 = vld [vmem:[%s1652_s2] ss:$0 sm:$0xff] }
  0x28   : > { %840 = vmatpush.bf16.msra.mxu3 %v1292_v27 }
  0x29   : > { %802 = vmatpush.bf16.msra.mxu0 %v1267_v30 }
  0x2a   : > { %815 = vmatpush.bf16.msra.mxu1 %v1275_v31 }
  0x2b   : > { %828 = vmatpush.bf16.msra.mxu2 %v1283_v34 }
  0x2c   : > { %841 = vmatpush.bf16.msra.mxu3 %v1291_v35  ;;  %803 = vmatmul.bf16.vlgmr.msra.gmra.mxu0 %v395_v44 }
  0x2d   : > { %847 = vmatpush.bf16.msrb.mxu0 %v1306_v38  ;;  %816 = vmatmul.bf16.vlgmr.msra.gmra.mxu1 %v396_v45 }
  0x2e   : > { %860 = vmatpush.bf16.msrb.mxu1 %v1314_v39  ;;  %829 = vmatmul.bf16.vlgmr.msra.gmra.mxu2 %v397_v42 }
  0x2f   : > { %873 = vmatpush.bf16.msrb.mxu2 %v1322_v40  ;;  %842 = vmatmul.bf16.vlgmr.msra.gmra.mxu3 %v398_v43  ;;  %v900_v43 = vld [vmem:[%s1653_s3] sm:$0xff] }
  0x30   : > { %886 = vmatpush.bf16.msrb.mxu3 %v1330_v41 }
  0x31   : > { %848 = vmatpush.bf16.msrb.mxu0 %v1305_v46 }
  0x32   : > { %861 = vmatpush.bf16.msrb.mxu1 %v1313_v47 }
  0x33   : > { %874 = vmatpush.bf16.msrb.mxu2 %v1321_v48 }
  0x34   : > { %887 = vmatpush.bf16.msrb.mxu3 %v1329_v49 }
  0x35   : > { %849 = vmatpush.bf16.msrb.mxu0 %v1304_v50 }
  0x36   : > { %862 = vmatpush.bf16.msrb.mxu1 %v1312_v51 }
  0x37   : > { %875 = vmatpush.bf16.msrb.mxu2 %v1320_v52 }
  0x38   : > { %888 = vmatpush.bf16.msrb.mxu3 %v1328_v53 }
  0x39   : > { %850 = vmatpush.bf16.msrb.mxu0 %v1303_v54 }
  0x3a   : > { %863 = vmatpush.bf16.msrb.mxu1 %v1311_v55 }
  0x3b   : > { %876 = vmatpush.bf16.msrb.mxu2 %v1319_v56 }
  0x3c   : > { %889 = vmatpush.bf16.msrb.mxu3 %v1327_v57 }
  0x3d   : > { %851 = vmatpush.bf16.msrb.mxu0 %v1302_v58 }
  0x3e   : > { %864 = vmatpush.bf16.msrb.mxu1 %v1310_v59 }
  0x3f   : > { %877 = vmatpush.bf16.msrb.mxu2 %v1318_v60 }
  0x40   : > { %890 = vmatpush.bf16.msrb.mxu3 %v1326_v61 }
  0x41   : > { %852 = vmatpush.bf16.msrb.mxu0 %v1301_v62 }
  0x42   : > { %865 = vmatpush.bf16.msrb.mxu1 %v1309_v63 }
  0x43   : > { %878 = vmatpush.bf16.msrb.mxu2 %v1317_v0 }
  0x44   : > { %891 = vmatpush.bf16.msrb.mxu3 %v1325_v1 }
  0x45   : > { %853 = vmatpush.bf16.msrb.mxu0 %v1300_v2 }
  0x46   : > { %866 = vmatpush.bf16.msrb.mxu1 %v1308_v3 }
  0x47   : > { %879 = vmatpush.bf16.msrb.mxu2 %v1316_v5 }
  0x48   : > { %892 = vmatpush.bf16.msrb.mxu3 %v1324_v6 }
  0x49   : > { %854 = vmatpush.bf16.msrb.mxu0 %v1299_v10 }
  0x4a   : > { %867 = vmatpush.bf16.msrb.mxu1 %v1307_v11 }
  0x4b   : > { %880 = vmatpush.bf16.msrb.mxu2 %v1315_v14 }
  0x4c   : > { %893 = vmatpush.bf16.msrb.mxu3 %v1323_v15  ;;  %855 = vmatmul.bf16.vlgmr.msrb.gmra.mxu0 %v399_v16 }
  0x4d   : > { %868 = vmatmul.bf16.vlgmr.msrb.gmra.mxu1 %v400_v17 }
  0x4e   : > { %881 = vmatmul.bf16.vlgmr.msrb.gmra.mxu2 %v401_v18 }
  0x4f   : > { %894 = vmatmul.bf16.vlgmr.msrb.gmra.mxu3 %v402_v19 }
  0xa9   : > { %v804_v20 = vpop.f32.mrf.mxu0 }
  0xaa   : > { %v817_v21 = vpop.f32.mrf.mxu1  ;;  %v805_v29 = vadd.f32 %v1355_v26, %v804_v20 }
  0xac   : > { %v818_v30 = vadd.f32 %v817_v21, %v805_v29 }
  0xb1   : > { %v830_v22 = vpop.f32.mrf.mxu2  ;;  %v806_v24 = vpop.f32.mrf.mxu0 }
  0xb2   : > { %v843_v23 = vpop.f32.mrf.mxu3  ;;  %v819_v25 = vpop.f32.mrf.mxu1  ;;  %v831_v31 = vadd.f32 %v830_v22, %v818_v30 }
  0xb4   : > { %v844_v32 = vadd.f32 %v843_v23, %v831_v31 }
  0xb9   : > { %v832_v27 = vpop.f32.mrf.mxu2 }
  0xba   : > { %v845_v28 = vpop.f32.mrf.mxu3 }
  0xc9   : > { %v856_v33 = vpop.f32.mrf.mxu0 }
  0xca   : > { %v869_v34 = vpop.f32.mrf.mxu1  ;;  %v857_v35 = vadd.f32 %v856_v33, %v844_v32 }
  0xcc   : > { %v870_v36 = vadd.f32 %v869_v34, %v857_v35 }
  0xd1   : > { %v882_v37 = vpop.f32.mrf.mxu2  ;;  %v858_v40 = vpop.f32.mrf.mxu0 }
  0xd2   : > { %v895_v38 = vpop.f32.mrf.mxu3  ;;  %v883_v39 = vadd.f32 %v882_v37, %v870_v36  ;;  %v871_v41 = vpop.f32.mrf.mxu1 }
  0xd4   : > { %v896_v42 = vadd.f32 %v895_v38, %v883_v39 }
  0xd6   : > { %v899_v44 = vmul.f32 5.656854, %v896_v42 }
  0xd8   : > { %v901_v45 = vadd.f32 %v900_v43, %v899_v44 }
  0xd9   : > { %v884_v46 = vpop.f32.mrf.mxu2 }
  0xda   : > { %v897_v47 = vpop.f32.mrf.mxu3  ;;  %902 = vst [vmem:[%s246_s29] sm:$0xff] %v901_v45 }
  0xdb PF: > { %s14_s17 = sadd.s32 1, %s1378_s17   ;;  %s1655_s15 = smov %s1374_s16 }
  0xdc   : > { %p11_p5 = scmp.ge.s32.totalorder %s14_s17, 4   ;;  %s1656_s16 = smov %s1658_s18 }
  0xde   :  { %13 = sbr.rel (!%p11_p5) target bundleno = 2 (0x2), region = 69 }

</bundles_post_ra>
